<compile_context>
chip_gen: v7x
topology: tpu7x:2x2x1
jax: 0.10.0
libtpu: 0.0.40
codegen_flags: <defaults>
</compile_context>

<pallas_src>
import numpy as np
import jax
import jax.numpy as jnp
from jax.experimental import pallas as pl
from jax.experimental.pallas import tpu as pltpu

BN_EPS = 1e-5

H_IN = 32                       # example input spatial size
C0, C1, C2, C3 = 3, 32, 64, 128
H1, H2, H3 = 15, 8, 4           # conv1 / ds1 / ds2-ds3 output spatial sizes
ROWS_PER_IMG = 9 * 64           # 9 ds1 taps x 64 ds1-output positions (g,u,v)
KP = 32                         # conv1 im2col K (27) padded to 32
WPACK_ROWS = 256
FPACK_ROWS = 34


# ---------------------------------------------------------------------------
# Static validity mask for conv1-output positions referenced by ds1's taps
# (pad-1 positions must stay exactly 0 after the in-kernel bias + ReLU).
# Row order matches the x1 slab: (ds1 tap k1, group g, u, v).
# ---------------------------------------------------------------------------
def _make_m1_mask():
    m = np.zeros((9, 4, 4, 4), np.float32)
    for k1 in range(9):
        kh1, kw1 = divmod(k1, 3)
        for g in range(4):
            gr, gc = divmod(g, 2)
            for u in range(4):
                for v in range(4):
                    ip = 2 * gr + kh1 + 4 * u     # padded conv1 row (0..16)
                    jp = 2 * gc + kw1 + 4 * v
                    if 1 <= ip <= 15 and 1 <= jp <= 15:
                        m[k1, g, u, v] = 1.0
    return m.reshape(ROWS_PER_IMG, 1)


_M1_MASK = _make_m1_mask()


# ---------------------------------------------------------------------------
# The fused kernel: one image per grid step.
# ---------------------------------------------------------------------------
def _shallow_net_kernel(x1_ref, m1_ref, wpack_ref, fpack_ref, o_ref):
    f32 = jnp.float32

    # ---- conv1 (3x3/s2) as a matmul over pre-ordered im2col rows -----------
    w1 = wpack_ref[0:32, 0:C1]                       # (32, 32) bf16
    b1 = fpack_ref[27:28, 0:C1]                      # (1, 32) f32
    c1 = jnp.dot(x1_ref[...], w1, preferred_element_type=f32)   # (576, 32)
    c1 = jnp.maximum(c1 + b1, 0.0) * m1_ref[...]     # pad rows forced to 0

    # ---- dsconv1: depthwise (tap k = contiguous 64-row block) + 1x1 --------
    acc1 = jnp.zeros((64, C1), f32)
    for k in range(9):
        acc1 = acc1 + c1[k * 64:(k + 1) * 64, :] * fpack_ref[k:k + 1, 0:C1]
    h1 = jnp.maximum(acc1 + fpack_ref[28:29, 0:C1], 0.0)
    y1 = jnp.dot(h1.astype(jnp.bfloat16), wpack_ref[32:64, 0:C2],
                 preferred_element_type=f32)
    y1 = jnp.maximum(y1 + fpack_ref[29:30, 0:C2], 0.0)   # (64, 64) rows (g,u,v)

    # column-wrap masks for flat row-shifted taps of 4x4 maps
    ridx = jax.lax.broadcasted_iota(jnp.int32, (16, 1), 0)
    not_col0 = jnp.where((ridx & 3) == 0, 0.0, 1.0)
    not_col3 = jnp.where((ridx & 3) == 3, 0.0, 1.0)

    # ---- dsconv2: stride-2 depthwise via parity groups + flat shifts + 1x1 -
    z5_2 = jnp.zeros((5, C2), f32)
    gpad = [jnp.concatenate([z5_2, y1[g * 16:(g + 1) * 16, :]], axis=0)
            for g in range(4)]                        # each (21, 64)
    acc2 = jnp.zeros((16, C2), f32)
    for kh in range(3):
        for kw in range(3):
            g = (0 if kh == 1 else 1) * 2 + (0 if kw == 1 else 1)
            du = -1 if kh == 0 else 0
            dv = -1 if kw == 0 else 0
            ofs = 4 * du + dv
            tap = gpad[g][5 + ofs:21 + ofs, :]        # (16, 64)
            if dv == -1:
                tap = tap * not_col0
            acc2 = acc2 + tap * fpack_ref[9 + kh * 3 + kw:10 + kh * 3 + kw, 0:C2]
    h2 = jnp.maximum(acc2 + fpack_ref[30:31, 0:C2], 0.0)
    y2 = jnp.dot(h2.astype(jnp.bfloat16), wpack_ref[64:128, 0:C3],
                 preferred_element_type=f32)
    y2 = jnp.maximum(y2 + fpack_ref[31:32, 0:C3], 0.0)   # (16, 128) rows (i2,j2)

    # ---- dsconv3: stride-1 depthwise via flat shifts + 1x1 ------------------
    z5_3 = jnp.zeros((5, C3), f32)
    y2p = jnp.concatenate([z5_3, y2, z5_3], axis=0)      # (26, 128)
    acc3 = jnp.zeros((16, C3), f32)
    for kh in range(3):
        for kw in range(3):
            ofs = 4 * (kh - 1) + (kw - 1)
            tap = y2p[5 + ofs:21 + ofs, :]               # (16, 128)
            if kw == 0:
                tap = tap * not_col0
            elif kw == 2:
                tap = tap * not_col3
            acc3 = acc3 + tap * fpack_ref[18 + kh * 3 + kw:19 + kh * 3 + kw, 0:C3]
    h3 = jnp.maximum(acc3 + fpack_ref[32:33, 0:C3], 0.0)
    y3 = jnp.dot(h3.astype(jnp.bfloat16), wpack_ref[128:256, 0:C3],
                 preferred_element_type=f32)
    o_ref[...] = jnp.maximum(y3 + fpack_ref[33:34, 0:C3], 0.0)   # (16, 128)


# ---------------------------------------------------------------------------
# XLA-side prep: conv1 im2col rows pre-ordered tap-major / parity-group-major
# so every in-kernel access is a static unit-stride slice.
# ---------------------------------------------------------------------------
def _build_conv1_tap_slab(x_nhwc):
    n_img = x_nhwc.shape[0]
    taps = []
    for kh0 in range(3):
        for kw0 in range(3):
            taps.append(x_nhwc[:, kh0:kh0 + 29:2, kw0:kw0 + 29:2, :])  # (N,15,15,3)
    cim = jnp.stack(taps, axis=3)                                      # (N,15,15,9,3)
    cimp = jnp.pad(cim, ((0, 0), (1, 1), (1, 1), (0, 0), (0, 0)))      # (N,17,17,9,3)
    blocks_k = []
    for kh1 in range(3):
        for kw1 in range(3):
            blocks_g = []
            for gr in range(2):
                for gc in range(2):
                    rs = 2 * gr + kh1
                    cs = 2 * gc + kw1
                    blocks_g.append(cimp[:, rs:rs + 13:4, cs:cs + 13:4])  # (N,4,4,9,3)
            blocks_k.append(jnp.stack(blocks_g, axis=1))                  # (N,4,4,4,9,3)
    x1 = jnp.stack(blocks_k, axis=1)                                      # (N,9,4,4,4,9,3)
    x1 = x1.reshape(n_img * ROWS_PER_IMG, 27)
    x1 = jnp.pad(x1, ((0, 0), (0, KP - 27))).astype(jnp.bfloat16)
    return x1


def shallow_net_forward(x_nchw, wpack, fpack):
    n_img = x_nchw.shape[0]
    assert x_nchw.shape[1:] == (C0, H_IN, H_IN), x_nchw.shape
    x = jnp.transpose(x_nchw, (0, 2, 3, 1))                # NHWC
    x1 = _build_conv1_tap_slab(x)                          # (N*576, 32) bf16
    m1 = jnp.asarray(_M1_MASK)                             # (576, 1) f32 constant

    out = pl.pallas_call(
        _shallow_net_kernel,
        out_shape=jax.ShapeDtypeStruct((n_img * H3 * H3, C3), jnp.float32),
        grid=(n_img,),
        in_specs=[
            pl.BlockSpec((ROWS_PER_IMG, KP), lambda n: (n, 0)),
            pl.BlockSpec((ROWS_PER_IMG, 1), lambda n: (0, 0)),
            pl.BlockSpec((WPACK_ROWS, 128), lambda n: (0, 0)),
            pl.BlockSpec((FPACK_ROWS, 128), lambda n: (0, 0)),
        ],
        out_specs=pl.BlockSpec((H3 * H3, C3), lambda n: (n, 0)),
        compiler_params=pltpu.CompilerParams(
            dimension_semantics=("parallel",)),
    )(x1, m1, wpack, fpack)

    return jnp.transpose(out.reshape(n_img, H3, H3, C3), (0, 3, 1, 2))


# ---------------------------------------------------------------------------
# Deterministic synthetic parameters (inference BN -> scale/bias, then folded)
# ---------------------------------------------------------------------------
def make_params(key):
    ks = jax.random.split(key, 14)

    def bn(k, c):
        k1, k2, k3, k4 = jax.random.split(k, 4)
        gamma = jax.random.uniform(k1, (c,), jnp.float32, 0.5, 1.5)
        beta = 0.1 * jax.random.normal(k2, (c,), jnp.float32)
        mean = 0.1 * jax.random.normal(k3, (c,), jnp.float32)
        var = jax.random.uniform(k4, (c,), jnp.float32, 0.5, 1.5)
        scale = gamma * jax.lax.rsqrt(var + BN_EPS)
        return scale, beta - mean * scale

    conv_w = 0.1 * jax.random.normal(ks[0], (3, 3, 3, C1), jnp.float32)
    conv_s, conv_b = bn(ks[1], C1)

    def ds(kw1, kb1, kw2, kb2, cin, cout):
        dw_w = 0.2 * jax.random.normal(kw1, (3, 3, cin), jnp.float32)
        dw_s, dw_b = bn(kb1, cin)
        pw_w = 0.1 * jax.random.normal(kw2, (cin, cout), jnp.float32)
        pw_s, pw_b = bn(kb2, cout)
        return dict(dw_w=dw_w, dw_s=dw_s, dw_b=dw_b,
                    pw_w=pw_w, pw_s=pw_s, pw_b=pw_b)

    return dict(
        conv=dict(w=conv_w, s=conv_s, b=conv_b),
        ds1=ds(ks[2], ks[3], ks[4], ks[5], C1, C2),
        ds2=ds(ks[6], ks[7], ks[8], ks[9], C2, C3),
        ds3=ds(ks[10], ks[11], ks[12], ks[13], C3, C3),
    )


def fold_params(P):
    """Fold BN scales into conv weights; biases stay separate (f32)."""
    F = {"w1": P["conv"]["w"] * P["conv"]["s"].reshape(1, 1, 1, C1),
         "b1": P["conv"]["b"]}
    for i, (name, cin, cout) in enumerate(
            [("ds1", C1, C2), ("ds2", C2, C3), ("ds3", C3, C3)], 1):
        p = P[name]
        F[f"dw{i}"] = p["dw_w"] * p["dw_s"].reshape(1, 1, cin)
        F[f"db{i}"] = p["dw_b"]
        F[f"pw{i}"] = p["pw_w"] * p["pw_s"].reshape(1, cout)
        F[f"pb{i}"] = p["pw_b"]
    return F


def pack_weights(F):
    """Consolidate all weights into one bf16 matrix pack + one f32 row pack."""
    wpack = jnp.zeros((WPACK_ROWS, 128), jnp.float32)
    wpack = wpack.at[0:27, 0:C1].set(F["w1"].reshape(27, C1))
    wpack = wpack.at[32:64, 0:C2].set(F["pw1"])
    wpack = wpack.at[64:128, 0:C3].set(F["pw2"])
    wpack = wpack.at[128:256, 0:C3].set(F["pw3"])
    wpack = wpack.astype(jnp.bfloat16)

    fpack = jnp.zeros((FPACK_ROWS, 128), jnp.float32)
    fpack = fpack.at[0:9, 0:C1].set(F["dw1"].reshape(9, C1))
    fpack = fpack.at[9:18, 0:C2].set(F["dw2"].reshape(9, C2))
    fpack = fpack.at[18:27, 0:C3].set(F["dw3"].reshape(9, C3))
    fpack = fpack.at[27, 0:C1].set(F["b1"])
    fpack = fpack.at[28, 0:C1].set(F["db1"])
    fpack = fpack.at[29, 0:C2].set(F["pb1"])
    fpack = fpack.at[30, 0:C2].set(F["db2"])
    fpack = fpack.at[31, 0:C3].set(F["pb2"])
    fpack = fpack.at[32, 0:C3].set(F["db3"])
    fpack = fpack.at[33, 0:C3].set(F["pb3"])
    return wpack, fpack


# ---------------------------------------------------------------------------
# Reference (same math / dtype policy: bf16 MXU operands, f32 accumulation)
# ---------------------------------------------------------------------------
def ref_forward(x_nchw, F):
    y = jnp.transpose(x_nchw, (0, 2, 3, 1))
    y = jax.lax.conv_general_dilated(
        y.astype(jnp.bfloat16), F["w1"].astype(jnp.bfloat16), (2, 2),
        [(0, 0), (0, 0)], dimension_numbers=("NHWC", "HWIO", "NHWC"),
        preferred_element_type=jnp.float32)
    y = jnp.maximum(y + F["b1"], 0.0)
    for i, s in ((1, 2), (2, 2), (3, 1)):
        dw, db = F[f"dw{i}"], F[f"db{i}"]
        pw, pb = F[f"pw{i}"], F[f"pb{i}"]
        c = dw.shape[-1]
        y = jax.lax.conv_general_dilated(
            y, dw.reshape(3, 3, 1, c), (s, s), [(1, 1), (1, 1)],
            feature_group_count=c,
            dimension_numbers=("NHWC", "HWIO", "NHWC"))
        y = jnp.maximum(y + db, 0.0)
        y = jnp.einsum("nhwc,co->nhwo", y.astype(jnp.bfloat16),
                       pw.astype(jnp.bfloat16),
                       preferred_element_type=jnp.float32)
        y = jnp.maximum(y + pb, 0.0)
    return jnp.transpose(y, (0, 3, 1, 2))


if __name__ == "__main__":
    key = jax.random.PRNGKey(0)
    kx, kp = jax.random.split(key)
    x = jax.random.normal(kx, (2, 3, 32, 32), jnp.float32)   # NCHW like PyTorch
    params = make_params(kp)
    folded = fold_params(params)
    wpack, fpack = pack_weights(folded)

    fwd = jax.jit(shallow_net_forward)
    out = jax.block_until_ready(fwd(x, wpack, fpack))
    assert out.shape == (2, 128, 4, 4), out.shape

    ref = ref_forward(x, folded)
    max_err = float(jnp.max(jnp.abs(out - ref)))
    assert jnp.allclose(out, ref, atol=2e-2, rtol=2e-2), max_err
    print("KERNEL_OK")
</pallas_src>

<mosaic_0001>
module attributes {stable_mosaic.version = 11 : i64} {
  func.func @_shallow_net_kernel(%arg0: i32, %arg1: memref<576x32xbf16, #tpu.memory_space<vmem>>, %arg2: memref<576x1xf32, #tpu.memory_space<vmem>>, %arg3: memref<256x128xbf16, #tpu.memory_space<vmem>>, %arg4: memref<34x128xf32, #tpu.memory_space<vmem>>, %arg5: memref<16x128xf32, #tpu.memory_space<vmem>>) attributes {dimension_semantics = [#tpu.dimension_semantics<parallel>], iteration_bounds = array<i64: 2>, scalar_prefetch = 0 : i64, scratch_operands = 0 : i64, tpu.core_type = #tpu.core_type<tc>, window_params = [{transform_indices = @transform_0, window_bounds = array<i64: 576, 32>}, {pipeline_mode = #tpu.pipeline_mode<synchronous>, transform_indices = @transform_1, window_bounds = array<i64: 576, 1>}, {pipeline_mode = #tpu.pipeline_mode<synchronous>, transform_indices = @transform_2, window_bounds = array<i64: 256, 128>}, {pipeline_mode = #tpu.pipeline_mode<synchronous>, transform_indices = @transform_3, window_bounds = array<i64: 34, 128>}, {transform_indices = @transform_4, window_bounds = array<i64: 16, 128>}]} {
    %c0 = arith.constant 0 : index
    %c0_0 = arith.constant 0 : index
    %0 = vector.load %arg3[%c0, %c0_0] : memref<256x128xbf16, #tpu.memory_space<vmem>>, vector<32x32xbf16>
    %c27 = arith.constant 27 : index
    %c0_1 = arith.constant 0 : index
    %1 = vector.load %arg4[%c27, %c0_1] : memref<34x128xf32, #tpu.memory_space<vmem>>, vector<1x32xf32>
    %c0_2 = arith.constant 0 : index
    %c0_3 = arith.constant 0 : index
    %2 = vector.load %arg1[%c0_2, %c0_3] : memref<576x32xbf16, #tpu.memory_space<vmem>>, vector<576x32xbf16>
    %cst = arith.constant dense<0.000000e+00> : vector<576x32xf32>
    %3 = tpu.matmul %2, %0, %cst {dimension_numbers = #tpu.dot_dimension_numbers<[1], [0], [0], [1], [0, 0, 1, 1], [], []>} : vector<576x32xbf16>, vector<32x32xbf16>, vector<576x32xf32> -> vector<576x32xf32>
    %4 = vector.broadcast %1 : vector<1x32xf32> to vector<576x32xf32>
    %5 = arith.addf %3, %4 : vector<576x32xf32>
    %cst_4 = arith.constant 0.000000e+00 : f32
    %6 = vector.broadcast %cst_4 : f32 to vector<576x32xf32>
    %7 = arith.maximumf %5, %6 : vector<576x32xf32>
    %c0_5 = arith.constant 0 : index
    %c0_6 = arith.constant 0 : index
    %8 = vector.load %arg2[%c0_5, %c0_6] : memref<576x1xf32, #tpu.memory_space<vmem>>, vector<576x1xf32>
    %9 = vector.broadcast %8 : vector<576x1xf32> to vector<576x32xf32>
    %10 = arith.mulf %7, %9 : vector<576x32xf32>
    %cst_7 = arith.constant 0.000000e+00 : f32
    %11 = vector.broadcast %cst_7 : f32 to vector<64x32xf32>
    %12 = vector.extract_strided_slice %10 {offsets = [0, 0], sizes = [64, 32], strides = [1, 1]} : vector<576x32xf32> to vector<64x32xf32>
    %c0_8 = arith.constant 0 : index
    %c0_9 = arith.constant 0 : index
    %13 = vector.load %arg4[%c0_8, %c0_9] : memref<34x128xf32, #tpu.memory_space<vmem>>, vector<1x32xf32>
    %14 = vector.broadcast %13 : vector<1x32xf32> to vector<64x32xf32>
    %15 = arith.mulf %12, %14 : vector<64x32xf32>
    %16 = arith.addf %11, %15 : vector<64x32xf32>
    %17 = vector.extract_strided_slice %10 {offsets = [64, 0], sizes = [64, 32], strides = [1, 1]} : vector<576x32xf32> to vector<64x32xf32>
    %c1 = arith.constant 1 : index
    %c0_10 = arith.constant 0 : index
    %18 = vector.load %arg4[%c1, %c0_10] : memref<34x128xf32, #tpu.memory_space<vmem>>, vector<1x32xf32>
    %19 = vector.broadcast %18 : vector<1x32xf32> to vector<64x32xf32>
    %20 = arith.mulf %17, %19 : vector<64x32xf32>
    %21 = arith.addf %16, %20 : vector<64x32xf32>
    %22 = vector.extract_strided_slice %10 {offsets = [128, 0], sizes = [64, 32], strides = [1, 1]} : vector<576x32xf32> to vector<64x32xf32>
    %c2 = arith.constant 2 : index
    %c0_11 = arith.constant 0 : index
    %23 = vector.load %arg4[%c2, %c0_11] : memref<34x128xf32, #tpu.memory_space<vmem>>, vector<1x32xf32>
    %24 = vector.broadcast %23 : vector<1x32xf32> to vector<64x32xf32>
    %25 = arith.mulf %22, %24 : vector<64x32xf32>
    %26 = arith.addf %21, %25 : vector<64x32xf32>
    %27 = vector.extract_strided_slice %10 {offsets = [192, 0], sizes = [64, 32], strides = [1, 1]} : vector<576x32xf32> to vector<64x32xf32>
    %c3 = arith.constant 3 : index
    %c0_12 = arith.constant 0 : index
    %28 = vector.load %arg4[%c3, %c0_12] : memref<34x128xf32, #tpu.memory_space<vmem>>, vector<1x32xf32>
    %29 = vector.broadcast %28 : vector<1x32xf32> to vector<64x32xf32>
    %30 = arith.mulf %27, %29 : vector<64x32xf32>
    %31 = arith.addf %26, %30 : vector<64x32xf32>
    %32 = vector.extract_strided_slice %10 {offsets = [256, 0], sizes = [64, 32], strides = [1, 1]} : vector<576x32xf32> to vector<64x32xf32>
    %c4 = arith.constant 4 : index
    %c0_13 = arith.constant 0 : index
    %33 = vector.load %arg4[%c4, %c0_13] : memref<34x128xf32, #tpu.memory_space<vmem>>, vector<1x32xf32>
    %34 = vector.broadcast %33 : vector<1x32xf32> to vector<64x32xf32>
    %35 = arith.mulf %32, %34 : vector<64x32xf32>
    %36 = arith.addf %31, %35 : vector<64x32xf32>
    %37 = vector.extract_strided_slice %10 {offsets = [320, 0], sizes = [64, 32], strides = [1, 1]} : vector<576x32xf32> to vector<64x32xf32>
    %c5 = arith.constant 5 : index
    %c0_14 = arith.constant 0 : index
    %38 = vector.load %arg4[%c5, %c0_14] : memref<34x128xf32, #tpu.memory_space<vmem>>, vector<1x32xf32>
    %39 = vector.broadcast %38 : vector<1x32xf32> to vector<64x32xf32>
    %40 = arith.mulf %37, %39 : vector<64x32xf32>
    %41 = arith.addf %36, %40 : vector<64x32xf32>
    %42 = vector.extract_strided_slice %10 {offsets = [384, 0], sizes = [64, 32], strides = [1, 1]} : vector<576x32xf32> to vector<64x32xf32>
    %c6 = arith.constant 6 : index
    %c0_15 = arith.constant 0 : index
    %43 = vector.load %arg4[%c6, %c0_15] : memref<34x128xf32, #tpu.memory_space<vmem>>, vector<1x32xf32>
    %44 = vector.broadcast %43 : vector<1x32xf32> to vector<64x32xf32>
    %45 = arith.mulf %42, %44 : vector<64x32xf32>
    %46 = arith.addf %41, %45 : vector<64x32xf32>
    %47 = vector.extract_strided_slice %10 {offsets = [448, 0], sizes = [64, 32], strides = [1, 1]} : vector<576x32xf32> to vector<64x32xf32>
    %c7 = arith.constant 7 : index
    %c0_16 = arith.constant 0 : index
    %48 = vector.load %arg4[%c7, %c0_16] : memref<34x128xf32, #tpu.memory_space<vmem>>, vector<1x32xf32>
    %49 = vector.broadcast %48 : vector<1x32xf32> to vector<64x32xf32>
    %50 = arith.mulf %47, %49 : vector<64x32xf32>
    %51 = arith.addf %46, %50 : vector<64x32xf32>
    %52 = vector.extract_strided_slice %10 {offsets = [512, 0], sizes = [64, 32], strides = [1, 1]} : vector<576x32xf32> to vector<64x32xf32>
    %c8 = arith.constant 8 : index
    %c0_17 = arith.constant 0 : index
    %53 = vector.load %arg4[%c8, %c0_17] : memref<34x128xf32, #tpu.memory_space<vmem>>, vector<1x32xf32>
    %54 = vector.broadcast %53 : vector<1x32xf32> to vector<64x32xf32>
    %55 = arith.mulf %52, %54 : vector<64x32xf32>
    %56 = arith.addf %51, %55 : vector<64x32xf32>
    %c28 = arith.constant 28 : index
    %c0_18 = arith.constant 0 : index
    %57 = vector.load %arg4[%c28, %c0_18] : memref<34x128xf32, #tpu.memory_space<vmem>>, vector<1x32xf32>
    %58 = vector.broadcast %57 : vector<1x32xf32> to vector<64x32xf32>
    %59 = arith.addf %56, %58 : vector<64x32xf32>
    %cst_19 = arith.constant 0.000000e+00 : f32
    %60 = vector.broadcast %cst_19 : f32 to vector<64x32xf32>
    %61 = arith.maximumf %59, %60 : vector<64x32xf32>
    %62 = arith.truncf %61 : vector<64x32xf32> to vector<64x32xbf16>
    %c32 = arith.constant 32 : index
    %c0_20 = arith.constant 0 : index
    %63 = vector.load %arg3[%c32, %c0_20] : memref<256x128xbf16, #tpu.memory_space<vmem>>, vector<32x64xbf16>
    %cst_21 = arith.constant dense<0.000000e+00> : vector<64x64xf32>
    %64 = tpu.matmul %62, %63, %cst_21 {dimension_numbers = #tpu.dot_dimension_numbers<[1], [0], [0], [1], [0, 0, 1, 1], [], []>} : vector<64x32xbf16>, vector<32x64xbf16>, vector<64x64xf32> -> vector<64x64xf32>
    %c29 = arith.constant 29 : index
    %c0_22 = arith.constant 0 : index
    %65 = vector.load %arg4[%c29, %c0_22] : memref<34x128xf32, #tpu.memory_space<vmem>>, vector<1x64xf32>
    %66 = vector.broadcast %65 : vector<1x64xf32> to vector<64x64xf32>
    %67 = arith.addf %64, %66 : vector<64x64xf32>
    %cst_23 = arith.constant 0.000000e+00 : f32
    %68 = vector.broadcast %cst_23 : f32 to vector<64x64xf32>
    %69 = arith.maximumf %67, %68 : vector<64x64xf32>
    %70 = tpu.iota {dimensions = array<i32: 0>} : vector<16x1xi32>
    %c3_i32 = arith.constant 3 : i32
    %71 = vector.broadcast %c3_i32 : i32 to vector<16x1xi32>
    %72 = arith.andi %70, %71 : vector<16x1xi32>
    %c0_i32 = arith.constant 0 : i32
    %73 = vector.broadcast %c0_i32 : i32 to vector<16x1xi32>
    %74 = arith.cmpi eq, %72, %73 : vector<16x1xi32>
    %cst_24 = arith.constant 0.000000e+00 : f32
    %cst_25 = arith.constant 1.000000e+00 : f32
    %75 = vector.broadcast %cst_24 : f32 to vector<16x1xf32>
    %76 = vector.broadcast %cst_25 : f32 to vector<16x1xf32>
    %77 = arith.select %74, %75, %76 : vector<16x1xi1>, vector<16x1xf32>
    %c3_i32_26 = arith.constant 3 : i32
    %78 = vector.broadcast %c3_i32_26 : i32 to vector<16x1xi32>
    %79 = arith.andi %70, %78 : vector<16x1xi32>
    %c3_i32_27 = arith.constant 3 : i32
    %80 = vector.broadcast %c3_i32_27 : i32 to vector<16x1xi32>
    %81 = arith.cmpi eq, %79, %80 : vector<16x1xi32>
    %cst_28 = arith.constant 0.000000e+00 : f32
    %cst_29 = arith.constant 1.000000e+00 : f32
    %82 = vector.broadcast %cst_28 : f32 to vector<16x1xf32>
    %83 = vector.broadcast %cst_29 : f32 to vector<16x1xf32>
    %84 = arith.select %81, %82, %83 : vector<16x1xi1>, vector<16x1xf32>
    %cst_30 = arith.constant 0.000000e+00 : f32
    %85 = vector.broadcast %cst_30 : f32 to vector<5x64xf32>
    %86 = vector.extract_strided_slice %69 {offsets = [0, 0], sizes = [16, 64], strides = [1, 1]} : vector<64x64xf32> to vector<16x64xf32>
    %87 = tpu.concatenate %85, %86 in 0 : vector<5x64xf32>, vector<16x64xf32> -> vector<21x64xf32>
    %88 = vector.extract_strided_slice %69 {offsets = [16, 0], sizes = [16, 64], strides = [1, 1]} : vector<64x64xf32> to vector<16x64xf32>
    %89 = tpu.concatenate %85, %88 in 0 : vector<5x64xf32>, vector<16x64xf32> -> vector<21x64xf32>
    %90 = vector.extract_strided_slice %69 {offsets = [32, 0], sizes = [16, 64], strides = [1, 1]} : vector<64x64xf32> to vector<16x64xf32>
    %91 = tpu.concatenate %85, %90 in 0 : vector<5x64xf32>, vector<16x64xf32> -> vector<21x64xf32>
    %92 = vector.extract_strided_slice %69 {offsets = [48, 0], sizes = [16, 64], strides = [1, 1]} : vector<64x64xf32> to vector<16x64xf32>
    %93 = tpu.concatenate %85, %92 in 0 : vector<5x64xf32>, vector<16x64xf32> -> vector<21x64xf32>
    %cst_31 = arith.constant 0.000000e+00 : f32
    %94 = vector.broadcast %cst_31 : f32 to vector<16x64xf32>
    %95 = vector.extract_strided_slice %93 {offsets = [0, 0], sizes = [16, 64], strides = [1, 1]} : vector<21x64xf32> to vector<16x64xf32>
    %96 = vector.broadcast %77 : vector<16x1xf32> to vector<16x64xf32>
    %97 = arith.mulf %95, %96 : vector<16x64xf32>
    %c9 = arith.constant 9 : index
    %c0_32 = arith.constant 0 : index
    %98 = vector.load %arg4[%c9, %c0_32] : memref<34x128xf32, #tpu.memory_space<vmem>>, vector<1x64xf32>
    %99 = vector.broadcast %98 : vector<1x64xf32> to vector<16x64xf32>
    %100 = arith.mulf %97, %99 : vector<16x64xf32>
    %101 = arith.addf %94, %100 : vector<16x64xf32>
    %102 = vector.extract_strided_slice %91 {offsets = [1, 0], sizes = [16, 64], strides = [1, 1]} : vector<21x64xf32> to vector<16x64xf32>
    %c10 = arith.constant 10 : index
    %c0_33 = arith.constant 0 : index
    %103 = vector.load %arg4[%c10, %c0_33] : memref<34x128xf32, #tpu.memory_space<vmem>>, vector<1x64xf32>
    %104 = vector.broadcast %103 : vector<1x64xf32> to vector<16x64xf32>
    %105 = arith.mulf %102, %104 : vector<16x64xf32>
    %106 = arith.addf %101, %105 : vector<16x64xf32>
    %107 = vector.extract_strided_slice %93 {offsets = [1, 0], sizes = [16, 64], strides = [1, 1]} : vector<21x64xf32> to vector<16x64xf32>
    %c11 = arith.constant 11 : index
    %c0_34 = arith.constant 0 : index
    %108 = vector.load %arg4[%c11, %c0_34] : memref<34x128xf32, #tpu.memory_space<vmem>>, vector<1x64xf32>
    %109 = vector.broadcast %108 : vector<1x64xf32> to vector<16x64xf32>
    %110 = arith.mulf %107, %109 : vector<16x64xf32>
    %111 = arith.addf %106, %110 : vector<16x64xf32>
    %112 = vector.extract_strided_slice %89 {offsets = [4, 0], sizes = [16, 64], strides = [1, 1]} : vector<21x64xf32> to vector<16x64xf32>
    %113 = vector.broadcast %77 : vector<16x1xf32> to vector<16x64xf32>
    %114 = arith.mulf %112, %113 : vector<16x64xf32>
    %c12 = arith.constant 12 : index
    %c0_35 = arith.constant 0 : index
    %115 = vector.load %arg4[%c12, %c0_35] : memref<34x128xf32, #tpu.memory_space<vmem>>, vector<1x64xf32>
    %116 = vector.broadcast %115 : vector<1x64xf32> to vector<16x64xf32>
    %117 = arith.mulf %114, %116 : vector<16x64xf32>
    %118 = arith.addf %111, %117 : vector<16x64xf32>
    %119 = vector.extract_strided_slice %87 {offsets = [5, 0], sizes = [16, 64], strides = [1, 1]} : vector<21x64xf32> to vector<16x64xf32>
    %c13 = arith.constant 13 : index
    %c0_36 = arith.constant 0 : index
    %120 = vector.load %arg4[%c13, %c0_36] : memref<34x128xf32, #tpu.memory_space<vmem>>, vector<1x64xf32>
    %121 = vector.broadcast %120 : vector<1x64xf32> to vector<16x64xf32>
    %122 = arith.mulf %119, %121 : vector<16x64xf32>
    %123 = arith.addf %118, %122 : vector<16x64xf32>
    %124 = vector.extract_strided_slice %89 {offsets = [5, 0], sizes = [16, 64], strides = [1, 1]} : vector<21x64xf32> to vector<16x64xf32>
    %c14 = arith.constant 14 : index
    %c0_37 = arith.constant 0 : index
    %125 = vector.load %arg4[%c14, %c0_37] : memref<34x128xf32, #tpu.memory_space<vmem>>, vector<1x64xf32>
    %126 = vector.broadcast %125 : vector<1x64xf32> to vector<16x64xf32>
    %127 = arith.mulf %124, %126 : vector<16x64xf32>
    %128 = arith.addf %123, %127 : vector<16x64xf32>
    %129 = vector.extract_strided_slice %93 {offsets = [4, 0], sizes = [16, 64], strides = [1, 1]} : vector<21x64xf32> to vector<16x64xf32>
    %130 = vector.broadcast %77 : vector<16x1xf32> to vector<16x64xf32>
    %131 = arith.mulf %129, %130 : vector<16x64xf32>
    %c15 = arith.constant 15 : index
    %c0_38 = arith.constant 0 : index
    %132 = vector.load %arg4[%c15, %c0_38] : memref<34x128xf32, #tpu.memory_space<vmem>>, vector<1x64xf32>
    %133 = vector.broadcast %132 : vector<1x64xf32> to vector<16x64xf32>
    %134 = arith.mulf %131, %133 : vector<16x64xf32>
    %135 = arith.addf %128, %134 : vector<16x64xf32>
    %136 = vector.extract_strided_slice %91 {offsets = [5, 0], sizes = [16, 64], strides = [1, 1]} : vector<21x64xf32> to vector<16x64xf32>
    %c16 = arith.constant 16 : index
    %c0_39 = arith.constant 0 : index
    %137 = vector.load %arg4[%c16, %c0_39] : memref<34x128xf32, #tpu.memory_space<vmem>>, vector<1x64xf32>
    %138 = vector.broadcast %137 : vector<1x64xf32> to vector<16x64xf32>
    %139 = arith.mulf %136, %138 : vector<16x64xf32>
    %140 = arith.addf %135, %139 : vector<16x64xf32>
    %141 = vector.extract_strided_slice %93 {offsets = [5, 0], sizes = [16, 64], strides = [1, 1]} : vector<21x64xf32> to vector<16x64xf32>
    %c17 = arith.constant 17 : index
    %c0_40 = arith.constant 0 : index
    %142 = vector.load %arg4[%c17, %c0_40] : memref<34x128xf32, #tpu.memory_space<vmem>>, vector<1x64xf32>
    %143 = vector.broadcast %142 : vector<1x64xf32> to vector<16x64xf32>
    %144 = arith.mulf %141, %143 : vector<16x64xf32>
    %145 = arith.addf %140, %144 : vector<16x64xf32>
    %c30 = arith.constant 30 : index
    %c0_41 = arith.constant 0 : index
    %146 = vector.load %arg4[%c30, %c0_41] : memref<34x128xf32, #tpu.memory_space<vmem>>, vector<1x64xf32>
    %147 = vector.broadcast %146 : vector<1x64xf32> to vector<16x64xf32>
    %148 = arith.addf %145, %147 : vector<16x64xf32>
    %cst_42 = arith.constant 0.000000e+00 : f32
    %149 = vector.broadcast %cst_42 : f32 to vector<16x64xf32>
    %150 = arith.maximumf %148, %149 : vector<16x64xf32>
    %151 = arith.truncf %150 : vector<16x64xf32> to vector<16x64xbf16>
    %c64 = arith.constant 64 : index
    %c0_43 = arith.constant 0 : index
    %152 = vector.load %arg3[%c64, %c0_43] : memref<256x128xbf16, #tpu.memory_space<vmem>>, vector<64x128xbf16>
    %cst_44 = arith.constant dense<0.000000e+00> : vector<16x128xf32>
    %153 = tpu.matmul %151, %152, %cst_44 {dimension_numbers = #tpu.dot_dimension_numbers<[1], [0], [0], [1], [0, 0, 1, 1], [], []>} : vector<16x64xbf16>, vector<64x128xbf16>, vector<16x128xf32> -> vector<16x128xf32>
    %c31 = arith.constant 31 : index
    %c0_45 = arith.constant 0 : index
    %154 = vector.load %arg4[%c31, %c0_45] : memref<34x128xf32, #tpu.memory_space<vmem>>, vector<1x128xf32>
    %155 = vector.broadcast %154 : vector<1x128xf32> to vector<16x128xf32>
    %156 = arith.addf %153, %155 : vector<16x128xf32>
    %cst_46 = arith.constant 0.000000e+00 : f32
    %157 = vector.broadcast %cst_46 : f32 to vector<16x128xf32>
    %158 = arith.maximumf %156, %157 : vector<16x128xf32>
    %cst_47 = arith.constant 0.000000e+00 : f32
    %159 = vector.broadcast %cst_47 : f32 to vector<5x128xf32>
    %160 = tpu.concatenate %159, %158, %159 in 0 : vector<5x128xf32>, vector<16x128xf32>, vector<5x128xf32> -> vector<26x128xf32>
    %cst_48 = arith.constant 0.000000e+00 : f32
    %161 = vector.broadcast %cst_48 : f32 to vector<16x128xf32>
    %162 = vector.extract_strided_slice %160 {offsets = [0, 0], sizes = [16, 128], strides = [1, 1]} : vector<26x128xf32> to vector<16x128xf32>
    %163 = vector.broadcast %77 : vector<16x1xf32> to vector<16x128xf32>
    %164 = arith.mulf %162, %163 : vector<16x128xf32>
    %c18 = arith.constant 18 : index
    %c0_49 = arith.constant 0 : index
    %165 = vector.load %arg4[%c18, %c0_49] : memref<34x128xf32, #tpu.memory_space<vmem>>, vector<1x128xf32>
    %166 = vector.broadcast %165 : vector<1x128xf32> to vector<16x128xf32>
    %167 = arith.mulf %164, %166 : vector<16x128xf32>
    %168 = arith.addf %161, %167 : vector<16x128xf32>
    %169 = vector.extract_strided_slice %160 {offsets = [1, 0], sizes = [16, 128], strides = [1, 1]} : vector<26x128xf32> to vector<16x128xf32>
    %c19 = arith.constant 19 : index
    %c0_50 = arith.constant 0 : index
    %170 = vector.load %arg4[%c19, %c0_50] : memref<34x128xf32, #tpu.memory_space<vmem>>, vector<1x128xf32>
    %171 = vector.broadcast %170 : vector<1x128xf32> to vector<16x128xf32>
    %172 = arith.mulf %169, %171 : vector<16x128xf32>
    %173 = arith.addf %168, %172 : vector<16x128xf32>
    %174 = vector.extract_strided_slice %160 {offsets = [2, 0], sizes = [16, 128], strides = [1, 1]} : vector<26x128xf32> to vector<16x128xf32>
    %175 = vector.broadcast %84 : vector<16x1xf32> to vector<16x128xf32>
    %176 = arith.mulf %174, %175 : vector<16x128xf32>
    %c20 = arith.constant 20 : index
    %c0_51 = arith.constant 0 : index
    %177 = vector.load %arg4[%c20, %c0_51] : memref<34x128xf32, #tpu.memory_space<vmem>>, vector<1x128xf32>
    %178 = vector.broadcast %177 : vector<1x128xf32> to vector<16x128xf32>
    %179 = arith.mulf %176, %178 : vector<16x128xf32>
    %180 = arith.addf %173, %179 : vector<16x128xf32>
    %181 = vector.extract_strided_slice %160 {offsets = [4, 0], sizes = [16, 128], strides = [1, 1]} : vector<26x128xf32> to vector<16x128xf32>
    %182 = vector.broadcast %77 : vector<16x1xf32> to vector<16x128xf32>
    %183 = arith.mulf %181, %182 : vector<16x128xf32>
    %c21 = arith.constant 21 : index
    %c0_52 = arith.constant 0 : index
    %184 = vector.load %arg4[%c21, %c0_52] : memref<34x128xf32, #tpu.memory_space<vmem>>, vector<1x128xf32>
    %185 = vector.broadcast %184 : vector<1x128xf32> to vector<16x128xf32>
    %186 = arith.mulf %183, %185 : vector<16x128xf32>
    %187 = arith.addf %180, %186 : vector<16x128xf32>
    %188 = vector.extract_strided_slice %160 {offsets = [5, 0], sizes = [16, 128], strides = [1, 1]} : vector<26x128xf32> to vector<16x128xf32>
    %c22 = arith.constant 22 : index
    %c0_53 = arith.constant 0 : index
    %189 = vector.load %arg4[%c22, %c0_53] : memref<34x128xf32, #tpu.memory_space<vmem>>, vector<1x128xf32>
    %190 = vector.broadcast %189 : vector<1x128xf32> to vector<16x128xf32>
    %191 = arith.mulf %188, %190 : vector<16x128xf32>
    %192 = arith.addf %187, %191 : vector<16x128xf32>
    %193 = vector.extract_strided_slice %160 {offsets = [6, 0], sizes = [16, 128], strides = [1, 1]} : vector<26x128xf32> to vector<16x128xf32>
    %194 = vector.broadcast %84 : vector<16x1xf32> to vector<16x128xf32>
    %195 = arith.mulf %193, %194 : vector<16x128xf32>
    %c23 = arith.constant 23 : index
    %c0_54 = arith.constant 0 : index
    %196 = vector.load %arg4[%c23, %c0_54] : memref<34x128xf32, #tpu.memory_space<vmem>>, vector<1x128xf32>
    %197 = vector.broadcast %196 : vector<1x128xf32> to vector<16x128xf32>
    %198 = arith.mulf %195, %197 : vector<16x128xf32>
    %199 = arith.addf %192, %198 : vector<16x128xf32>
    %200 = vector.extract_strided_slice %160 {offsets = [8, 0], sizes = [16, 128], strides = [1, 1]} : vector<26x128xf32> to vector<16x128xf32>
    %201 = vector.broadcast %77 : vector<16x1xf32> to vector<16x128xf32>
    %202 = arith.mulf %200, %201 : vector<16x128xf32>
    %c24 = arith.constant 24 : index
    %c0_55 = arith.constant 0 : index
    %203 = vector.load %arg4[%c24, %c0_55] : memref<34x128xf32, #tpu.memory_space<vmem>>, vector<1x128xf32>
    %204 = vector.broadcast %203 : vector<1x128xf32> to vector<16x128xf32>
    %205 = arith.mulf %202, %204 : vector<16x128xf32>
    %206 = arith.addf %199, %205 : vector<16x128xf32>
    %207 = vector.extract_strided_slice %160 {offsets = [9, 0], sizes = [16, 128], strides = [1, 1]} : vector<26x128xf32> to vector<16x128xf32>
    %c25 = arith.constant 25 : index
    %c0_56 = arith.constant 0 : index
    %208 = vector.load %arg4[%c25, %c0_56] : memref<34x128xf32, #tpu.memory_space<vmem>>, vector<1x128xf32>
    %209 = vector.broadcast %208 : vector<1x128xf32> to vector<16x128xf32>
    %210 = arith.mulf %207, %209 : vector<16x128xf32>
    %211 = arith.addf %206, %210 : vector<16x128xf32>
    %212 = vector.extract_strided_slice %160 {offsets = [10, 0], sizes = [16, 128], strides = [1, 1]} : vector<26x128xf32> to vector<16x128xf32>
    %213 = vector.broadcast %84 : vector<16x1xf32> to vector<16x128xf32>
    %214 = arith.mulf %212, %213 : vector<16x128xf32>
    %c26 = arith.constant 26 : index
    %c0_57 = arith.constant 0 : index
    %215 = vector.load %arg4[%c26, %c0_57] : memref<34x128xf32, #tpu.memory_space<vmem>>, vector<1x128xf32>
    %216 = vector.broadcast %215 : vector<1x128xf32> to vector<16x128xf32>
    %217 = arith.mulf %214, %216 : vector<16x128xf32>
    %218 = arith.addf %211, %217 : vector<16x128xf32>
    %c32_58 = arith.constant 32 : index
    %c0_59 = arith.constant 0 : index
    %219 = vector.load %arg4[%c32_58, %c0_59] : memref<34x128xf32, #tpu.memory_space<vmem>>, vector<1x128xf32>
    %220 = vector.broadcast %219 : vector<1x128xf32> to vector<16x128xf32>
    %221 = arith.addf %218, %220 : vector<16x128xf32>
    %cst_60 = arith.constant 0.000000e+00 : f32
    %222 = vector.broadcast %cst_60 : f32 to vector<16x128xf32>
    %223 = arith.maximumf %221, %222 : vector<16x128xf32>
    %224 = arith.truncf %223 : vector<16x128xf32> to vector<16x128xbf16>
    %c128 = arith.constant 128 : index
    %c0_61 = arith.constant 0 : index
    %225 = vector.load %arg3[%c128, %c0_61] : memref<256x128xbf16, #tpu.memory_space<vmem>>, vector<128x128xbf16>
    %cst_62 = arith.constant dense<0.000000e+00> : vector<16x128xf32>
    %226 = tpu.matmul %224, %225, %cst_62 {dimension_numbers = #tpu.dot_dimension_numbers<[1], [0], [0], [1], [0, 0, 1, 1], [], []>} : vector<16x128xbf16>, vector<128x128xbf16>, vector<16x128xf32> -> vector<16x128xf32>
    %c33 = arith.constant 33 : index
    %c0_63 = arith.constant 0 : index
    %227 = vector.load %arg4[%c33, %c0_63] : memref<34x128xf32, #tpu.memory_space<vmem>>, vector<1x128xf32>
    %228 = vector.broadcast %227 : vector<1x128xf32> to vector<16x128xf32>
    %229 = arith.addf %226, %228 : vector<16x128xf32>
    %cst_64 = arith.constant 0.000000e+00 : f32
    %230 = vector.broadcast %cst_64 : f32 to vector<16x128xf32>
    %231 = arith.maximumf %229, %230 : vector<16x128xf32>
    %c0_65 = arith.constant 0 : index
    %c0_66 = arith.constant 0 : index
    %232 = vector.load %arg5[%c0_65, %c0_66] : memref<16x128xf32, #tpu.memory_space<vmem>>, vector<16x128xf32>
    tpu.vector_store %arg5[%c0_65, %c0_66], %231 {strides = array<i32>} : memref<16x128xf32, #tpu.memory_space<vmem>>, vector<16x128xf32>,
    return
  }
  func.func @transform_0(%arg0: i32) -> (i32, i32) {
    %c0_i32 = arith.constant 0 : i32
    %c0_i32_0 = arith.constant 0 : i32
    return %arg0, %c0_i32 : i32, i32
  }
  func.func @transform_1(%arg0: i32) -> (i32, i32) {
    %c0_i32 = arith.constant 0 : i32
    %c0_i32_0 = arith.constant 0 : i32
    %c0_i32_1 = arith.constant 0 : i32
    return %c0_i32, %c0_i32_0 : i32, i32
  }
  func.func @transform_2(%arg0: i32) -> (i32, i32) {
    %c0_i32 = arith.constant 0 : i32
    %c0_i32_0 = arith.constant 0 : i32
    %c0_i32_1 = arith.constant 0 : i32
    return %c0_i32, %c0_i32_0 : i32, i32
  }
  func.func @transform_3(%arg0: i32) -> (i32, i32) {
    %c0_i32 = arith.constant 0 : i32
    %c0_i32_0 = arith.constant 0 : i32
    %c0_i32_1 = arith.constant 0 : i32
    return %c0_i32, %c0_i32_0 : i32, i32
  }
  func.func @transform_4(%arg0: i32) -> (i32, i32) {
    %c0_i32 = arith.constant 0 : i32
    %c0_i32_0 = arith.constant 0 : i32
    return %arg0, %c0_i32 : i32, i32
  }
}

</mosaic_0001>

<bundles_post_ra>
// kernel: shallow_net_forward.1
= control target key start
LH: loop header
LB: loop body
LE: loop exit
PB: predicated region body
PF: predicated region fallthrough
CT: control target
= control target key end

     0   :  { %9 = vsyncpa [#allocation3], 0  ;;  %s4348_s0 = inlined_call_operand.vmem [shape: bf16[1152,32], index: 0, kind: input, shape index: {}]   ;;  %s4349_s1 = inlined_call_operand.vmem [shape: f32[576,1], index: 1, kind: input, shape index: {}]   ;;  %s4350_s2 = inlined_call_operand.vmem [shape: bf16[256,128], index: 2, kind: input, shape index: {}]   ;;  %s4351_s3 = inlined_call_operand.vmem [shape: f32[34,128], index: 3, kind: input, shape index: {}]   ;;  %s4352_s4 = inlined_call_operand.hbm [shape: f32[32,128], index: 4, kind: output, shape index: {}]  }
   0x1   :  { %11 = vsyncpa [#allocation3 + $0x1], 0  ;;  %s3047_s15 = smov 0   ;;  %s3049_s16 = smov 0  }
   0x2   :  { %s3051_s17 = smov 0   ;;  %s3053_s18 = smov 0  }
   0x3 LB: > { %s3068_s19 = sadd.s32 4294967295, %s3013_s18   ;;  %s2531_s20 = sadd.s32 4294967294, %s3013_s18   ;;  %s3013_s18 = sphi %s3053_s18, %s4403_s18   ;;  %s3009_s17 = sphi %s3051_s17, %s4402_s17   ;;  %s3005_s16 = sphi %s3049_s16, %s4401_s16   ;;  %s3001_s15 = sphi %s3047_s15, %s4400_s15  }
   0x4   : > { %s3072_s21 = sadd.s32 1, %s3013_s18   ;;  %s113_s22 = sadd.s32 1, %s3009_s17 }
   0x5   : > { %s110_s23 = ssub.s32 %s3013_s18, %s3072_s21  ;;  %p123_p0 = scmp.ne.s32.totalorder %s3009_s17, %s3005_s16 }
   0x6   : > { %p111_p1 = scmp.eq.s32.totalorder %s110_s23, 0  ;;  %p124_p2 = scmp.eq.s32.totalorder %s3068_s19, 1 }
   0x7   : > { %p129_p3 = scmp.ne.s32.totalorder %s3005_s16, %s3001_s15  ;;  %p130_p4 = scmp.eq.s32.totalorder %s2531_s20, 1 }
   0x8   : > { %s3083_s24 = scalar_select %p111_p1, %s3009_s17, %s113_s22  }
   0x9   : > { %p3085_p5 = por %p124_p2, %p123_p0  ;;  %p3089_p6 = por %p130_p4, %p129_p3 }
   0xa   : > { %p2534_p7 = scmp.ge.s32.totalorder %s3013_s18, 1  ;;  %p166_p8 = scmp.lt.s32.totalorder %s3013_s18, 3 }
   0xc   : > { %p167_p9 = pnand %p2534_p7, %p166_p8 }
   0xe   : > { %170 = sbr.rel (%p167_p9) target bundleno = 1116 (0x45c), region = 36 }
  0x15   : > { %v983_v0 = vld [vmem:[%s4349_s1 + $0x40] sm:$0xff]  ;;  %s192_s5 = smul.u32 72, %s3068_s19  ;;  %v3015_v2 = vmov 0   ;;  %v984_v4 = vld [vmem:[%s4349_s1 + $0x48] sm:$0xff]  ;;  %v978_v7 = vld [vmem:[%s4349_s1 + $0x18] sm:$0xff]  ;;  %vm473_vm0 = vcmask 261120  }
  0x16   : > { %v975_v1 = vld [vmem:[%s4349_s1] sm:$0xff]  ;;  %2898 = vset.pattern.permute.xlu1 %v3015_v2  ;;  %2897 = vset.pattern.permute.xlu0 %v3015_v2  ;;  %v976_v5 = vld [vmem:[%s4349_s1 + $0x8] sm:$0xff]  ;;  %v977_v8 = vld [vmem:[%s4349_s1 + $0x10] sm:$0xff]  ;;  %vm3018_vm2 = vmmov 0   ;;  %vm1814_vm6 = vcmask 1044480   ;;  %vm1903_vm7 = vcmask 1043456  }
  0x17   : > { %v2899_v3 = vld [vmem:[%s4350_s2] sm:$0xff]   ;;  %1089 = vperm.xlu1 %2898, %v983_v0   ;;  %1049 = vperm.xlu0 %2897, %v975_v1   ;;  %p193_p10 = scmp.lt.s32.totalorder %s192_s5, 143  ;;  %v2900_v6 = vld [vmem:[%s4350_s2 + $0x8] sm:$0xff]   ;;  %v986_v11 = vld [vmem:[%s4349_s1 + $0x58] sm:$0xff]  ;;  %vm1944_vm8 = vcmask 1042432   ;;  %vm1871_vm9 = vcmask 1046528  }
  0x18   : > { %2728 = vmatprep.subr.bf16.mxu0 %v2899_v3  ;;  %2848 = vmatprep.subr.bf16.mxu1 %v2899_v3  ;;  %v985_v12 = vld [vmem:[%s4349_s1 + $0x50] sm:$0xff]  ;;  %v992_v16 = vld [vmem:[%s4349_s1 + $0x88] sm:$0xff]  ;;  %v991_v18 = vld [vmem:[%s4349_s1 + $0x80] sm:$0xff]  ;;  %vm2084_vm10 = vcmask 523264   ;;  %vm2195_vm11 = vcmask 1045504   ;;  %vm2174_vm12 = vcmask 1041408  }
  0x19   : > { %2729 = vmatpush3.bf16.msra.mxu0 %v2899_v3  ;;  %2850 = vmatpush3.bf16.msra.mxu1 %v2899_v3  ;;  %s4405_s5 = smov (!%p193_p10, %s192_s5), 143  ;;  %v994_v21 = vld [vmem:[%s4349_s1 + $0x98] sm:$0xff]  ;;  %v993_v23 = vld [vmem:[%s4349_s1 + $0x90] sm:$0xff]  ;;  %v1000_v25 = vld [vmem:[%s4349_s1 + $0xc8] sm:$0xff]  ;;  %s189_s20 = sand.u32 1, %s3005_s16  }
  0x1a   : > { %2730 = vmatprep.subr.bf16.mxu0 %v2900_v6  ;;  %2849 = vmatprep.subr.bf16.mxu1 %v2900_v6  ;;  %s2536_s14 = sshll.u32 %s4405_s5, 2  ;;  %v999_v26 = vld [vmem:[%s4349_s1 + $0xc0] sm:$0xff]  ;;  %v1002_v30 = vld [vmem:[%s4349_s1 + $0xd8] sm:$0xff]  ;;  %v1001_v31 = vld [vmem:[%s4349_s1 + $0xd0] sm:$0xff]  ;;  %s2535_s22 = sshll.u32 %s189_s20, 4 }
  0x1b   : > { %1094 = vperm.xlu1 %2898, %v984_v4   ;;  %1054 = vperm.xlu0 %2897, %v976_v5   ;;  %s3123_s30 = scalar_lea.vmem %s4348_s0, %s2536_s14  ;;  %v1008_v33 = vld [vmem:[%s4349_s1 + $0x108] sm:$0xff]  ;;  %v1007_v34 = vld [vmem:[%s4349_s1 + $0x100] sm:$0xff]  ;;  %v1010_v37 = vld [vmem:[%s4349_s1 + $0x118] sm:$0xff]  ;;  %s191_s28 = scalar_lea.vmem [#allocation2], %s2535_s22 }
  0x1c   : > { %v2901_v9 = vld [vmem:[%s3123_s30] sm:$0xff]   ;;  %v2902_v10 = vld [vmem:[%s3123_s30 + $0xd0] sm:$0xff]   ;;  %v2903_v13 = vld [vmem:[%s3123_s30 + $0x8] sm:$0xff]   ;;  %s2469_s29 = sshll.u32 %s191_s28, 4  ;;  %s2669_s5 = sshll.u32 %s3068_s19, 8  ;;  %s4300_s29 = int_to_ptr.vmem [resolvable:$true] %s2469_s29 }
  0x1d   : > { %2731 = vmatpush3.bf16.msra.mxu0 %v2900_v6  ;;  %2851 = vmatpush3.bf16.msra.mxu1 %v2900_v6  ;;  %v2904_v14 = vld [vmem:[%s3123_s30 + $0xd8] sm:$0xff]   ;;  %v2905_v15 = vld [vmem:[%s3123_s30 + $0x10] sm:$0xff]   ;;  %v2906_v17 = vld [vmem:[%s3123_s30 + $0xe0] sm:$0xff]   ;;  %s4305_s8 = scalar_lea.hbm %s4352_s4, %s2669_s5  ;;  %s4307_s9 = scalar_lea.sflag [#allocation3], %s189_s20 }
  0x1e   : > { %2732 = vmatprep.mubr.msk.bf16.mxu0 %vm473_vm0, %v2901_v9  ;;  %2784 = vmatprep.mubr.msk.bf16.mxu1 %vm473_vm0, %v2902_v10  ;;  %v2907_v19 = vld [vmem:[%s3123_s30 + $0x18] sm:$0xff]   ;;  %v2908_v20 = vld [vmem:[%s3123_s30 + $0xe8] sm:$0xff]   ;;  %v2909_v22 = vld [vmem:[%s3123_s30 + $0x20] sm:$0xff]   ;;  %s2951_s10 = scalar_lea.vmem %s4300_s29, 256  ;;  %s3019_s19 = smov [#allocation2]  }
  0x1f   : > { %1064 = vperm.xlu1 %2898, %v978_v7   ;;  %1059 = vperm.xlu0 %2897, %v977_v8   ;;  %v2910_v24 = vld [vmem:[%s3123_s30 + $0xf0] sm:$0xff]   ;;  %v2911_v27 = vld [vmem:[%s3123_s30 + $0x28] sm:$0xff]   ;;  %v2912_v28 = vld [vmem:[%s3123_s30 + $0xf8] sm:$0xff]   ;;  %p2952_p11 = scmp.ne.s32.totalorder %s4300_s29, %s2951_s10  ;;  %s2955_s11 = sshll.u32 %s3019_s19, 4  ;;  %s2956_s11 = int_to_ptr.vmem [resolvable:$false] %s2955_s11 }
  0x20   : > { %2733 = vmatmul.mubr.msk.bf16.vlgmr.msra.gmra.mrb[0].mxu0 %vm473_vm0, %v2903_v13  ;;  %2785 = vmatmul.mubr.msk.bf16.vlgmr.msra.gmra.mrb[0].mxu1 %vm473_vm0, %v2904_v14  ;;  %v2913_v29 = vld [vmem:[%s3123_s30 + $0x30] sm:$0xff]   ;;  %v2914_v32 = vld [vmem:[%s3123_s30 + $0x100] sm:$0xff]   ;;  %v2915_v35 = vld [vmem:[%s3123_s30 + $0x38] sm:$0xff]   ;;  %p2958_p0 = scmp.lt.s32.totalorder %s4300_s29, %s2956_s11 }
  0x21   : > { %2736 = vmatprep.mubr.msk.bf16.mxu0 %vm473_vm0, %v2905_v15  ;;  %2788 = vmatprep.mubr.msk.bf16.mxu1 %vm473_vm0, %v2906_v17  ;;  %v2916_v36 = vld [vmem:[%s3123_s30 + $0x108] sm:$0xff]   ;;  %v2917_v38 = vld [vmem:[%s3123_s30 + $0x40] sm:$0xff]   ;;  %v1009_v39 = vld [vmem:[%s4349_s1 + $0x110] sm:$0xff]  ;;  %p2953_p12 = pnand %p2952_p11, %p3085_p5 }
  0x22   : > { %v2919_v40 = vld [vmem:[%s3123_s30 + $0x110] sm:$0xff]   ;;  %v980_v41 = vld [vmem:[%s4349_s1 + $0x28] sm:$0xff]  ;;  %v979_v42 = vld [vmem:[%s4349_s1 + $0x20] sm:$0xff] }
  0x23   : > { %1104 = vperm.xlu1 %2898, %v986_v11   ;;  %1099 = vperm.xlu0 %2897, %v985_v12   ;;  %v2918_v43 = vld [vmem:[%s3123_s30 + $0x48] sm:$0xff]   ;;  %v2920_v44 = vld [vmem:[%s3123_s30 + $0x118] sm:$0xff]   ;;  %v2921_v45 = vld [vmem:[%s3123_s30 + $0x50] sm:$0xff]   ;;  %p2954_p13 = pneg %p2953_p12 }
  0x24   : > { %v988_v46 = vld [vmem:[%s4349_s1 + $0x68] sm:$0xff]  ;;  %v987_v47 = vld [vmem:[%s4349_s1 + $0x60] sm:$0xff]  ;;  %v2922_v50 = vld [vmem:[%s3123_s30 + $0x58] sm:$0xff]  }
  0x25   : > { %v1016_v48 = vld [vmem:[%s4349_s1 + $0x148] sm:$0xff]  ;;  %v1015_v49 = vld [vmem:[%s4349_s1 + $0x140] sm:$0xff]  ;;  %v982_v52 = vld [vmem:[%s4349_s1 + $0x38] sm:$0xff] }
  0x26   : > { %v2923_v51 = vld [vmem:[%s3123_s30 + $0x60] sm:$0xff]   ;;  %v981_v53 = vld [vmem:[%s4349_s1 + $0x30] sm:$0xff]  ;;  %v990_v54 = vld [vmem:[%s4349_s1 + $0x78] sm:$0xff] }
  0x27   : > { %1134 = vperm.xlu1 %2898, %v992_v16   ;;  %1129 = vperm.xlu0 %2897, %v991_v18   ;;  %v989_v55 = vld [vmem:[%s4349_s1 + $0x70] sm:$0xff]  ;;  %v2924_v56 = vld [vmem:[%s3123_s30 + $0x68] sm:$0xff]   ;;  %v1018_v58 = vld [vmem:[%s4349_s1 + $0x158] sm:$0xff] }
  0x28   : > { %2737 = vmatmul.mubr.msk.bf16.gmra.mrb[4].mxu0 %vm473_vm0, %v2907_v19  ;;  %2789 = vmatmul.mubr.msk.bf16.gmra.mrb[4].mxu1 %vm473_vm0, %v2908_v20  ;;  %v2925_v57 = vld [vmem:[%s3123_s30 + $0x70] sm:$0xff]   ;;  %v996_v60 = vld [vmem:[%s4349_s1 + $0xa8] sm:$0xff]  ;;  %v995_v61 = vld [vmem:[%s4349_s1 + $0xa0] sm:$0xff] }
  0x29   : > { %2740 = vmatprep.mubr.msk.bf16.mxu0 %vm473_vm0, %v2909_v22  ;;  %2792 = vmatprep.mubr.msk.bf16.mxu1 %vm473_vm0, %v2910_v24  ;;  %v1017_v59 = vld [vmem:[%s4349_s1 + $0x150] sm:$0xff]  ;;  %v2926_v62 = vld [vmem:[%s3123_s30 + $0x78] sm:$0xff]   ;;  %v2927_v63 = vld [vmem:[%s3123_s30 + $0x80] sm:$0xff]  }
  0x2a   : > { %v1024_v0 = vld [vmem:[%s4349_s1 + $0x188] sm:$0xff]  ;;  %v1023_v1 = vld [vmem:[%s4349_s1 + $0x180] sm:$0xff]  ;;  %v998_v2 = vld [vmem:[%s4349_s1 + $0xb8] sm:$0xff] }
  0x2b   : > { %1144 = vperm.xlu1 %2898, %v994_v21   ;;  %1139 = vperm.xlu0 %2897, %v993_v23   ;;  %v997_v3 = vld [vmem:[%s4349_s1 + $0xb0] sm:$0xff]  ;;  %v2928_v4 = vld [vmem:[%s3123_s30 + $0x88] sm:$0xff]   ;;  %v1026_v6 = vld [vmem:[%s4349_s1 + $0x198] sm:$0xff] }
  0x2c   : > { %v2929_v5 = vld [vmem:[%s3123_s30 + $0x90] sm:$0xff]   ;;  %v1004_v8 = vld [vmem:[%s4349_s1 + $0xe8] sm:$0xff]  ;;  %v1003_v9 = vld [vmem:[%s4349_s1 + $0xe0] sm:$0xff] }
  0x2d   : > { %v1025_v7 = vld [vmem:[%s4349_s1 + $0x190] sm:$0xff]  ;;  %v2930_v10 = vld [vmem:[%s3123_s30 + $0x98] sm:$0xff]   ;;  %v2931_v11 = vld [vmem:[%s3123_s30 + $0xa0] sm:$0xff]  }
  0x2e   : > { %v1032_v12 = vld [vmem:[%s4349_s1 + $0x1c8] sm:$0xff]  ;;  %v1031_v13 = vld [vmem:[%s4349_s1 + $0x1c0] sm:$0xff]  ;;  %v1006_v14 = vld [vmem:[%s4349_s1 + $0xf8] sm:$0xff] }
  0x2f   : > { %1174 = vperm.xlu1 %2898, %v1000_v25   ;;  %1169 = vperm.xlu0 %2897, %v999_v26   ;;  %v1005_v15 = vld [vmem:[%s4349_s1 + $0xf0] sm:$0xff]  ;;  %v2932_v16 = vld [vmem:[%s3123_s30 + $0xa8] sm:$0xff]   ;;  %v1034_v18 = vld [vmem:[%s4349_s1 + $0x1d8] sm:$0xff] }
  0x30   : > { %2741 = vmatmul.mubr.msk.bf16.gmra.mrb[8].mxu0 %vm473_vm0, %v2911_v27  ;;  %2793 = vmatmul.mubr.msk.bf16.gmra.mrb[8].mxu1 %vm473_vm0, %v2912_v28  ;;  %v2933_v17 = vld [vmem:[%s3123_s30 + $0xb0] sm:$0xff]   ;;  %v1012_v20 = vld [vmem:[%s4349_s1 + $0x128] sm:$0xff]  ;;  %v1011_v21 = vld [vmem:[%s4349_s1 + $0x120] sm:$0xff] }
  0x31   : > { %2744 = vmatprep.mubr.msk.bf16.mxu0 %vm473_vm0, %v2913_v29  ;;  %2796 = vmatprep.mubr.msk.bf16.mxu1 %vm473_vm0, %v2914_v32  ;;  %v1033_v19 = vld [vmem:[%s4349_s1 + $0x1d0] sm:$0xff]  ;;  %v2934_v22 = vld [vmem:[%s3123_s30 + $0xb8] sm:$0xff]   ;;  %v2935_v23 = vld [vmem:[%s3123_s30 + $0xc0] sm:$0xff]  }
  0x32   : > { %v1040_v24 = vld [vmem:[%s4349_s1 + $0x208] sm:$0xff]  ;;  %v1039_v25 = vld [vmem:[%s4349_s1 + $0x200] sm:$0xff]  ;;  %v1014_v26 = vld [vmem:[%s4349_s1 + $0x138] sm:$0xff] }
  0x33   : > { %1184 = vperm.xlu1 %2898, %v1002_v30   ;;  %1179 = vperm.xlu0 %2897, %v1001_v31   ;;  %v1013_v27 = vld [vmem:[%s4349_s1 + $0x130] sm:$0xff]  ;;  %v2936_v28 = vld [vmem:[%s3123_s30 + $0xc8] sm:$0xff]   ;;  %v1042_v29 = vld [vmem:[%s4349_s1 + $0x218] sm:$0xff]  ;;  %s2957_s30 = scalar_lea.vmem %s2956_s11, 512 }
  0x34   : > { %v1041_v30 = vld [vmem:[%s4349_s1 + $0x210] sm:$0xff]  ;;  %v1020_v31 = vld [vmem:[%s4349_s1 + $0x168] sm:$0xff]  ;;  %v1019_v32 = vld [vmem:[%s4349_s1 + $0x160] sm:$0xff]  ;;  %p2959_p1 = scmp.lt.s32.totalorder %s2957_s30, %s2951_s10 }
  0x36   : > { %p2960_p2 = por %p2959_p1, %p2958_p0 }
  0x37   : > { %1214 = vperm.xlu1 %2898, %v1008_v33   ;;  %1209 = vperm.xlu0 %2897, %v1007_v34   ;;  %v1022_v33 = vld [vmem:[%s4349_s1 + $0x178] sm:$0xff]  ;;  %v1021_v34 = vld [vmem:[%s4349_s1 + $0x170] sm:$0xff] }
  0x38   : > { %2745 = vmatmul.mubr.msk.bf16.gmra.mrb[12].mxu0 %vm473_vm0, %v2915_v35  ;;  %2797 = vmatmul.mubr.msk.bf16.gmra.mrb[12].mxu1 %vm473_vm0, %v2916_v36  ;;  %v1028_v35 = vld [vmem:[%s4349_s1 + $0x1a8] sm:$0xff]  ;;  %v1027_v36 = vld [vmem:[%s4349_s1 + $0x1a0] sm:$0xff]  ;;  %p2961_p3 = pnand %p2960_p2, %p2954_p13 }
  0x39   : > { %2748 = vmatprep.mubr.msk.bf16.mxu0 %vm473_vm0, %v2917_v38  ;;  %2800 = vmatprep.mubr.msk.bf16.mxu1 %vm473_vm0, %v2919_v40  ;;  %v1029_v38 = vld [vmem:[%s4349_s1 + $0x1b0] sm:$0xff]  ;;  %v1035_v40 = vld [vmem:[%s4349_s1 + $0x1e0] sm:$0xff] }
  0x3b   : > { %1224 = vperm.xlu1 %2898, %v1010_v37   ;;  %1219 = vperm.xlu0 %2897, %v1009_v39   ;;  %v1030_v37 = vld [vmem:[%s4349_s1 + $0x1b8] sm:$0xff]  ;;  %v1036_v39 = vld [vmem:[%s4349_s1 + $0x1e8] sm:$0xff] }
  0x3f   : > { %1074 = vperm.xlu1 %2898, %v980_v41   ;;  %1069 = vperm.xlu0 %2897, %v979_v42  }
  0x40   : > { %2749 = vmatmul.mubr.msk.bf16.gmra.mrb[16].mxu0 %vm473_vm0, %v2918_v43  ;;  %2801 = vmatmul.mubr.msk.bf16.gmra.mrb[16].mxu1 %vm473_vm0, %v2920_v44  ;;  %v1038_v43 = vld [vmem:[%s4349_s1 + $0x1f8] sm:$0xff]  ;;  %v1037_v44 = vld [vmem:[%s4349_s1 + $0x1f0] sm:$0xff] }
  0x41   : > { %2752 = vmatprep.mubr.msk.bf16.mxu0 %vm473_vm0, %v2921_v45 }
  0x43   : > { %1114 = vperm.xlu1 %2898, %v988_v46   ;;  %1109 = vperm.xlu0 %2897, %v987_v47   ;;  %v1044_v47 = vld [vmem:[%s4349_s1 + $0x228] sm:$0xff] }
  0x47   : > { %1254 = vperm.xlu1 %2898, %v1016_v48   ;;  %1249 = vperm.xlu0 %2897, %v1015_v49   ;;  %v1043_v48 = vld [vmem:[%s4349_s1 + $0x220] sm:$0xff] }
  0x48   : > { %2753 = vmatmul.mubr.msk.bf16.gmra.mrb[20].mxu0 %vm473_vm0, %v2922_v50 }
  0x49   : > { %2756 = vmatprep.mubr.msk.bf16.mxu0 %vm473_vm0, %v2923_v51  ;;  %v1046_v51 = vld [vmem:[%s4349_s1 + $0x238] sm:$0xff] }
  0x4b   : > { %1084 = vperm.xlu1 %2898, %v982_v52   ;;  %1079 = vperm.xlu0 %2897, %v981_v53   ;;  %v1045_v52 = vld [vmem:[%s4349_s1 + $0x230] sm:$0xff] }
  0x4f   : > { %1124 = vperm.xlu1 %2898, %v990_v54   ;;  %1119 = vperm.xlu0 %2897, %v989_v55  }
  0x50   : > { %2757 = vmatmul.mubr.msk.bf16.gmra.mrb[24].mxu0 %vm473_vm0, %v2924_v56 }
  0x51   : > { %2760 = vmatprep.mubr.msk.bf16.mxu0 %vm473_vm0, %v2925_v57 }
  0x53   : > { %1264 = vperm.xlu1 %2898, %v1018_v58   ;;  %1259 = vperm.xlu0 %2897, %v1017_v59  }
  0x57   : > { %1154 = vperm.xlu1 %2898, %v996_v60   ;;  %1149 = vperm.xlu0 %2897, %v995_v61  }
  0x58   : > { %2761 = vmatmul.mubr.msk.bf16.gmra.mrb[28].mxu0 %vm473_vm0, %v2926_v62 }
  0x59   : > { %2764 = vmatprep.mubr.msk.bf16.mxu0 %vm473_vm0, %v2927_v63 }
  0x5b   : > { %1294 = vperm.xlu1 %2898, %v1024_v0   ;;  %1289 = vperm.xlu0 %2897, %v1023_v1  }
  0x5f   : > { %1164 = vperm.xlu1 %2898, %v998_v2   ;;  %1159 = vperm.xlu0 %2897, %v997_v3  }
  0x60   : > { %2765 = vmatmul.mubr.msk.bf16.gmra.mrb[32].mxu0 %vm473_vm0, %v2928_v4 }
  0x61   : > { %2768 = vmatprep.mubr.msk.bf16.mxu0 %vm473_vm0, %v2929_v5 }
  0x63   : > { %1304 = vperm.xlu1 %2898, %v1026_v6   ;;  %1299 = vperm.xlu0 %2897, %v1025_v7  }
  0x67   : > { %1194 = vperm.xlu1 %2898, %v1004_v8   ;;  %1189 = vperm.xlu0 %2897, %v1003_v9  }
  0x68   : > { %2769 = vmatmul.mubr.msk.bf16.gmra.mrb[36].mxu0 %vm473_vm0, %v2930_v10 }
  0x69   : > { %2772 = vmatprep.mubr.msk.bf16.mxu0 %vm473_vm0, %v2931_v11  ;;  %v2937_v11 = vld [vmem:[%s4350_s2 + $0x10] sm:$0xff]  }
  0x6a   : > { %2804 = vmatprep.subr.bf16.mxu1 %v2937_v11 }
  0x6b   : > { %1334 = vperm.xlu1 %2898, %v1032_v12   ;;  %1329 = vperm.xlu0 %2897, %v1031_v13  }
  0x6c   : > { %2805 = vmatpush3.bf16.msra.mxu1 %v2937_v11 }
  0x6f   : > { %1204 = vperm.xlu1 %2898, %v1006_v14   ;;  %1199 = vperm.xlu0 %2897, %v1005_v15  }
  0x70   : > { %2773 = vmatmul.mubr.msk.bf16.gmra.mrb[40].mxu0 %vm473_vm0, %v2932_v16 }
  0x71   : > { %2776 = vmatprep.mubr.msk.bf16.mxu0 %vm473_vm0, %v2933_v17 }
  0x73   : > { %1344 = vperm.xlu1 %2898, %v1034_v18   ;;  %1339 = vperm.xlu0 %2897, %v1033_v19  }
  0x77   : > { %1234 = vperm.xlu1 %2898, %v1012_v20   ;;  %1229 = vperm.xlu0 %2897, %v1011_v21  }
  0x78   : > { %2777 = vmatmul.mubr.msk.bf16.gmra.mrb[44].mxu0 %vm473_vm0, %v2934_v22  ;;  %v2938_v22 = vld [vmem:[%s4350_s2 + $0x18] sm:$0xff]  }
  0x79   : > { %2780 = vmatprep.mubr.msk.bf16.mxu0 %vm473_vm0, %v2935_v23  ;;  %2806 = vmatprep.subr.bf16.mxu1 %v2938_v22 }
  0x7a   : > { %2807 = vmatpush3.bf16.msra.mxu1 %v2938_v22 }
  0x7b   : > { %1374 = vperm.xlu1 %2898, %v1040_v24   ;;  %1369 = vperm.xlu0 %2897, %v1039_v25  }
  0x7f   : > { %1244 = vperm.xlu1 %2898, %v1014_v26   ;;  %1239 = vperm.xlu0 %2897, %v1013_v27  }
  0x80   : > { %2781 = vmatmul.mubr.msk.bf16.gmra.mrb[48].mxu0 %vm473_vm0, %v2936_v28 }
  0x83   : > { %1384 = vperm.xlu1 %2898, %v1042_v29   ;;  %1379 = vperm.xlu0 %2897, %v1041_v30  }
  0x87   : > { %1274 = vperm.xlu1 %2898, %v1020_v31   ;;  %1269 = vperm.xlu0 %2897, %v1019_v32  }
  0x8b   : > { %1284 = vperm.xlu1 %2898, %v1022_v33   ;;  %1279 = vperm.xlu0 %2897, %v1021_v34  }
  0x8f   : > { %1314 = vperm.xlu1 %2898, %v1028_v35   ;;  %1309 = vperm.xlu0 %2897, %v1027_v36  }
  0x93   : > { %1324 = vperm.xlu1 %2898, %v1030_v37   ;;  %1319 = vperm.xlu0 %2897, %v1029_v38   ;;  %v3494_v37 = vld [vmem:[%s4351_s3 + $0x1b] ss:$0 sm:$0xff] }
  0x96   : > { %v3377_v41 = vpop.permute.xlu1 %1089  ;;  %v3379_v42 = vpop.permute.xlu0 %1049 }
  0x97   : > { %1354 = vperm.xlu1 %2898, %v1036_v39   ;;  %1349 = vperm.xlu0 %2897, %v1035_v40  }
  0x9a   : > { %v3387_v45 = vpop.permute.xlu1 %1094  ;;  %v3389_v46 = vpop.permute.xlu0 %1054 }
  0x9b   : > { %1364 = vperm.xlu1 %2898, %v1038_v43   ;;  %1359 = vperm.xlu0 %2897, %v1037_v44  }
  0x9e   : > { %v3397_v49 = vpop.permute.xlu1 %1064  ;;  %v3399_v50 = vpop.permute.xlu0 %1059 }
  0x9f   : > { %1394 = vperm.xlu1 %2898, %v1044_v47   ;;  %1389 = vperm.xlu0 %2897, %v1043_v48  }
  0xa2   : > { %v3407_v53 = vpop.permute.xlu1 %1104  ;;  %v3409_v54 = vpop.permute.xlu0 %1099 }
  0xa3   : > { %1404 = vperm.xlu1 %2898, %v1046_v51   ;;  %1399 = vperm.xlu0 %2897, %v1045_v52  }
  0xa6   : > { %v3411_v55 = vpop.permute.xlu1 %1134  ;;  %v3413_v56 = vpop.permute.xlu0 %1129 }
  0xaa   : > { %v3415_v57 = vpop.permute.xlu1 %1144  ;;  %v3417_v58 = vpop.permute.xlu0 %1139 }
  0xae   : > { %v3419_v59 = vpop.permute.xlu1 %1174  ;;  %v3421_v60 = vpop.permute.xlu0 %1169 }
  0xb2   : > { %v3423_v61 = vpop.permute.xlu1 %1184  ;;  %v3425_v62 = vpop.permute.xlu0 %1179 }
  0xb6   : > { %v3427_v63 = vpop.permute.xlu1 %1214  ;;  %v3429_v0 = vpop.permute.xlu0 %1209 }
  0xb7   : > { %4355 = vst [vmem:[#allocation5_spill] sm:$0xff] %v3427_v63  ;;  %4356 = vst [vmem:[#allocation6_spill] sm:$0xff] %v3429_v0 }
  0xba   : > { %v3431_v1 = vpop.permute.xlu1 %1224  ;;  %v3433_v2 = vpop.permute.xlu0 %1219 }
  0xbb   : > { %4357 = vst [vmem:[#allocation7_spill] sm:$0xff] %v3431_v1  ;;  %4358 = vst [vmem:[#allocation8_spill] sm:$0xff] %v3433_v2 }
  0xbe   : > { %v3435_v3 = vpop.permute.xlu1 %1074  ;;  %v1070_v4 = vpop.permute.xlu0 %1069 }
  0xc2   : > { %v3437_v5 = vpop.permute.xlu1 %1114  ;;  %v3439_v6 = vpop.permute.xlu0 %1109 }
  0xc6   : > { %v3441_v7 = vpop.permute.xlu1 %1254  ;;  %v3443_v8 = vpop.permute.xlu0 %1249 }
  0xc7   : > { %4359 = vst [vmem:[#allocation9_spill] sm:$0xff] %v3441_v7  ;;  %4360 = vst [vmem:[#allocation10_spill] sm:$0xff] %v3443_v8 }
  0xca   : > { %v1085_v9 = vpop.permute.xlu1 %1084  ;;  %v1080_v10 = vpop.permute.xlu0 %1079 }
  0xce   : > { %v3448_v12 = vpop.permute.xlu1 %1124  ;;  %v3450_v13 = vpop.permute.xlu0 %1119 }
  0xd2   : > { %v3452_v14 = vpop.permute.xlu1 %1264  ;;  %v3454_v15 = vpop.permute.xlu0 %1259 }
  0xd3   : > { %4361 = vst [vmem:[#allocation11_spill] sm:$0xff] %v3452_v14  ;;  %4362 = vst [vmem:[#allocation12_spill] sm:$0xff] %v3454_v15 }
  0xd6   : > { %v3456_v16 = vpop.permute.xlu1 %1154  ;;  %v3458_v17 = vpop.permute.xlu0 %1149 }
  0xda   : > { %v3460_v18 = vpop.permute.xlu1 %1294  ;;  %v3462_v19 = vpop.permute.xlu0 %1289 }
  0xdb   : > { %4363 = vst [vmem:[#allocation13_spill] sm:$0xff] %v3460_v18  ;;  %4364 = vst [vmem:[#allocation14_spill] sm:$0xff] %v3462_v19 }
  0xde   : > { %v3464_v20 = vpop.permute.xlu1 %1164  ;;  %v3466_v21 = vpop.permute.xlu0 %1159 }
  0xe2   : > { %v3471_v23 = vpop.permute.xlu1 %1304  ;;  %v3473_v24 = vpop.permute.xlu0 %1299 }
  0xe3   : > { %4365 = vst [vmem:[#allocation15_spill] sm:$0xff] %v3471_v23  ;;  %4366 = vst [vmem:[#allocation16_spill] sm:$0xff] %v3473_v24 }
  0xe6   : > { %v3475_v25 = vpop.permute.xlu1 %1194  ;;  %v3477_v26 = vpop.permute.xlu0 %1189 }
  0xe7   : > { %4367 = vst [vmem:[#allocation17_spill] sm:$0xff] %v3475_v25 }
  0xea   : > { %v3481_v30 = vpop.permute.xlu1 %1334  ;;  %v3487_v35 = vpop.permute.xlu0 %1329 }
  0xee   : > { %v3499_v44 = vpop.permute.xlu1 %1204  ;;  %v3504_v51 = vpop.permute.xlu0 %1199 }
  0xef   : > { %4368 = vst [vmem:[#allocation18_spill] sm:$0xff] %v3499_v44 }
  0xf2   : > { %v3519_v63 = vpop.permute.xlu1 %1344 }
  0xf3   : > { %v2734_v27 = vpop.f32.mrb[0].mxu0  ;;  %v3479_v29 = vpop.f32.mrb[0].mxu1 }
  0xf4   : > { %v616_v28 = vpop.f32.mrb[1].mxu0  ;;  %v3483_v32 = vpop.f32.mrb[1].mxu1  ;;  %v625_v52 = vadd.f32 %v2734_v27, %v3494_v37 }
  0xf5   : > { %v2735_v31 = vpop.f32.mrb[2].mxu0  ;;  %v3485_v34 = vpop.f32.mrb[2].mxu1  ;;  %v617_v18 = vadd.f32 %v3494_v37, %v616_v28 }
  0xf6   : > { %v619_v33 = vpop.f32.mrb[3].mxu0  ;;  %v3489_v36 = vpop.f32.mrb[3].mxu1  ;;  %v628_v23 = vadd.f32 %v2735_v31, %v3494_v37 }
  0xf7   : > { %v620_v8 = vadd.f32 %v3494_v37, %v619_v33  ;;  %v903_v28 = vmax.f32 %v617_v18, 0.0  ;;  %v3554_v44 = vpop.permute.xlu1 %1234 }
  0xf8   : > { %v906_v31 = vmax.f32 %v628_v23, 0.0  ;;  %4369 = vst [vmem:[#allocation19_spill] sm:$0xff] %v3554_v44 }
  0xf9   : > { %v904_v2 = vmax.f32 %v620_v8, 0.0 }
  0xfb   : > { %v2738_v38 = vpop.f32.mrb[4].mxu0  ;;  %v3497_v40 = vpop.f32.mrb[4].mxu1  ;;  %v1408_v25 = vmul.f32 %v3389_v46, %v904_v2 }
  0xfc   : > { %v641_v39 = vadd.f32 %v2738_v38, %v3494_v37  ;;  %v632_v43 = vpop.f32.mrb[5].mxu0  ;;  %v3502_v48 = vpop.f32.mrb[5].mxu1 }
  0xfd   : > { %v633_v47 = vadd.f32 %v3494_v37, %v632_v43  ;;  %v2739_v22 = vpop.f32.mrb[6].mxu0  ;;  %v3510_v24 = vpop.f32.mrb[6].mxu1 }
  0xfe   : > { %v909_v11 = vmax.f32 %v641_v39, 0.0  ;;  %v644_v19 = vadd.f32 %v2739_v22, %v3494_v37  ;;  %v635_v7 = vpop.f32.mrb[7].mxu0  ;;  %v3514_v43 = vpop.f32.mrb[7].mxu1  ;;  %v905_v39 = vmax.f32 %v625_v52, 0.0 }
  0xff   : > { %v907_v38 = vmax.f32 %v633_v47, 0.0 }
 0x100   : > { %v3512_v14 = vmul.f32 %v1080_v10, %v909_v11  ;;  %v910_v27 = vmax.f32 %v644_v19, 0.0  ;;  %v3526_v11 = vpop.permute.xlu0 %1339  ;;  %v1409_v19 = vmul.f32 %v3399_v50, %v905_v39 }
 0x101   : > { %v3517_v15 = vmul.f32 %v1070_v4, %v907_v38  ;;  %v1407_v38 = vmul.f32 %v3379_v42, %v903_v28 }
 0x102   : > { %v3521_v47 = vmul.f32 %v1085_v9, %v910_v27  ;;  %v3534_v9 = vld [vmem:[%s4351_s3] ss:$0 sm:$0xff]  ;;  %v1410_v27 = vmul.f32 %v3397_v49, %v906_v31 }
 0x103   : > { %v2742_v22 = vpop.f32.mrb[8].mxu0  ;;  %v3524_v10 = vpop.f32.mrb[8].mxu1  ;;  %v1486_v31 = vmul.f32 %v3534_v9, %v1409_v19 }
 0x104   : > { %v657_v1 = vadd.f32 %v2742_v22, %v3494_v37  ;;  %v648_v0 = vpop.f32.mrb[9].mxu0 }
 0x105   : > { %v649_v4 = vadd.f32 %v3494_v37, %v648_v0  ;;  %v2743_v33 = vpop.f32.mrb[10].mxu0  ;;  %v3541_v0 = vld [vmem:[%s4351_s3 + $0x1] ss:$0 sm:$0xff] }
 0x106   : > { %v913_v52 = vmax.f32 %v657_v1, 0.0  ;;  %v660_v18 = vadd.f32 %v2743_v33, %v3494_v37  ;;  %v651_v23 = vpop.f32.mrb[11].mxu0  ;;  %v3544_v1 = vpop.f32.mrb[9].mxu1 }
 0x107   : > { %v911_v8 = vmax.f32 %v649_v4, 0.0  ;;  %v652_v50 = vadd.f32 %v3494_v37, %v651_v23  ;;  %v3547_v33 = vpop.f32.mrb[10].mxu1 }
 0x108   : > { %v1417_v39 = vmul.f32 %v3409_v54, %v913_v52  ;;  %v914_v22 = vmax.f32 %v660_v18, 0.0  ;;  %v3551_v28 = vpop.f32.mrb[11].mxu1  ;;  %v1484_v54 = vmul.f32 %v3534_v9, %v1407_v38  ;;  %v3559_v52 = vpop.permute.xlu0 %1229  ;;  %v1487_v18 = vmul.f32 %v3534_v9, %v1410_v27 }
 0x109   : > { %v1415_v42 = vmul.f32 %v3377_v41, %v911_v8  ;;  %v912_v49 = vmax.f32 %v652_v50, 0.0  ;;  %4370 = vst [vmem:[#allocation20_spill] sm:$0xff] %v3559_v52  ;;  %v636_v8 = vadd.f32 %v3494_v37, %v635_v7 }
 0x10a   : > { %v1507_v4 = vmul.f32 %v3541_v0, %v1417_v39  ;;  %v1418_v23 = vmul.f32 %v3407_v53, %v914_v22  ;;  %v1485_v22 = vmul.f32 %v3534_v9, %v1408_v25 }
 0x10b   : > { %v1505_v46 = vmul.f32 %v3541_v0, %v1415_v42  ;;  %v1416_v41 = vmul.f32 %v3387_v45, %v912_v49  ;;  %v2746_v2 = vpop.f32.mrb[12].mxu0  ;;  %v3569_v53 = vpop.f32.mrb[12].mxu1 }
 0x10c   : > { %v3565_v19 = vadd.f32 %v1507_v4, %v1486_v31  ;;  %v1508_v50 = vmul.f32 %v3541_v0, %v1418_v23  ;;  %v673_v39 = vadd.f32 %v2746_v2, %v3494_v37  ;;  %4371 = vst [vmem:[#allocation21_spill] sm:$0xff] %v3569_v53  ;;  %v664_v38 = vpop.f32.mrb[13].mxu0  ;;  %v3576_v42 = vpop.f32.mrb[13].mxu1  ;;  %v908_v53 = vmax.f32 %v636_v8, 0.0 }
 0x10d   : > { %v3572_v44 = vadd.f32 %v1505_v46, %v1484_v54  ;;  %v1506_v27 = vmul.f32 %v3541_v0, %v1416_v41  ;;  %v665_v45 = vadd.f32 %v3494_v37, %v664_v38  ;;  %v2747_v31 = vpop.f32.mrb[14].mxu0  ;;  %v3582_v2 = vpop.f32.mrb[14].mxu1 }
 0x10e   : > { %v3578_v7 = vadd.f32 %v1508_v50, %v1487_v18  ;;  %v917_v49 = vmax.f32 %v673_v39, 0.0  ;;  %v667_v52 = vpop.f32.mrb[15].mxu0  ;;  %v676_v54 = vadd.f32 %v2747_v31, %v3494_v37  ;;  %v3586_v46 = vpop.f32.mrb[15].mxu1  ;;  %v1490_v39 = vmul.f32 %v3534_v9, %v3512_v14 }
 0x10f   : > { %v3580_v4 = vadd.f32 %v1506_v27, %v1485_v22  ;;  %v915_v23 = vmax.f32 %v665_v45, 0.0  ;;  %v3588_v41 = vpop.permute.xlu1 %1374  ;;  %v3591_v50 = vpop.permute.xlu0 %1369  ;;  %v668_v8 = vadd.f32 %v3494_v37, %v667_v52  ;;  %v1491_v52 = vmul.f32 %v3534_v9, %v3521_v47 }
 0x110   : > { %v1421_v25 = vmul.f32 %v3450_v13, %v917_v49  ;;  %4372 = vst [vmem:[#allocation22_spill] sm:$0xff] %v3588_v41  ;;  %v918_v22 = vmax.f32 %v676_v54, 0.0  ;;  %v1488_v13 = vmul.f32 %v3534_v9, %v3517_v15  ;;  %v1412_v49 = vmul.f32 %v3435_v3, %v908_v53 }
 0x111   : > { %v1419_v18 = vmul.f32 %v3439_v6, %v915_v23  ;;  %v916_v23 = vmax.f32 %v668_v8, 0.0 }
 0x112   : > { %v1511_v38 = vmul.f32 %v3541_v0, %v1421_v25  ;;  %v1422_v6 = vmul.f32 %v3448_v12, %v918_v22  ;;  %v1489_v8 = vmul.f32 %v3534_v9, %v1412_v49 }
 0x113   : > { %v1509_v27 = vmul.f32 %v3541_v0, %v1419_v18  ;;  %v2750_v45 = vpop.f32.mrb[16].mxu0  ;;  %v3604_v14 = vpop.f32.mrb[16].mxu1  ;;  %v1420_v18 = vmul.f32 %v3437_v5, %v916_v23  ;;  %v3629_v5 = vld [vmem:[%s4351_s3 + $0x2] ss:$0 sm:$0xff] }
 0x114   : > { %v3601_v31 = vadd.f32 %v1511_v38, %v1490_v39  ;;  %v680_v41 = vpop.f32.mrb[17].mxu0  ;;  %v1512_v15 = vmul.f32 %v3541_v0, %v1422_v6  ;;  %v689_v3 = vadd.f32 %v2750_v45, %v3494_v37  ;;  %v3613_v39 = vpop.permute.xlu1 %1244 }
 0x115   : > { %v3606_v25 = vadd.f32 %v1509_v27, %v1488_v13  ;;  %v2751_v54 = vpop.f32.mrb[18].mxu0  ;;  %v681_v12 = vadd.f32 %v3494_v37, %v680_v41  ;;  %v3616_v38 = vpop.f32.mrb[17].mxu1  ;;  %v1510_v47 = vmul.f32 %v3541_v0, %v1420_v18  ;;  %v3640_v0 = vadd.f32 %v3479_v29, %v3494_v37 }
 0x116   : > { %v683_v53 = vpop.f32.mrb[19].mxu0  ;;  %4373 = vst [vmem:[#allocation23_spill] sm:$0xff] %v3616_v38  ;;  %v3618_v22 = vpop.permute.xlu0 %1239  ;;  %v3621_v13 = vadd.f32 %v1512_v15, %v1491_v52  ;;  %v921_v27 = vmax.f32 %v689_v3, 0.0  ;;  %v692_v9 = vadd.f32 %v2751_v54, %v3494_v37  ;;  %v849_v18 = vadd.f32 %v3497_v40, %v3494_v37 }
 0x117   : > { %v3624_v6 = vpop.f32.mrb[18].mxu1  ;;  %v919_v45 = vmax.f32 %v681_v12, 0.0  ;;  %v3633_v23 = vadd.f32 %v1510_v47, %v1489_v8  ;;  %v684_v49 = vadd.f32 %v3494_v37, %v683_v53 }
 0x118   : > { %4374 = vst [vmem:[#allocation24_spill] sm:$0xff] %v3624_v6  ;;  %v3631_v41 = vpop.f32.mrb[19].mxu1  ;;  %v1425_v38 = vmul.f32 %v3417_v58, %v921_v27  ;;  %v922_v12 = vmax.f32 %v692_v9, 0.0  ;;  %v841_v58 = vadd.f32 %v3494_v37, %v3502_v48  ;;  %v3648_v54 = vpop.permute.xlu1 %1384  ;;  %v3661_v48 = vadd.f32 %v3494_v37, %v3483_v32 }
 0x119   : > { %v1423_v52 = vmul.f32 %v3413_v56, %v919_v45  ;;  %v920_v8 = vmax.f32 %v684_v49, 0.0  ;;  %v3665_v49 = vadd.f32 %v3485_v34, %v3494_v37  ;;  %v844_v34 = vadd.f32 %v3494_v37, %v3514_v43 }
 0x11a   : > { %v1528_v3 = vmul.f32 %v3629_v5, %v1425_v38  ;;  %v3651_v27 = vpop.permute.xlu0 %1379  ;;  %v1426_v40 = vmul.f32 %v3415_v57, %v922_v12  ;;  %v959_v12 = vmax.f32 %v841_v58, 0.0  ;;  %v3692_v43 = vadd.f32 %v3494_v37, %v3489_v36 }
 0x11b   : > { %v2754_v15 = vpop.f32.mrb[20].mxu0  ;;  %v1526_v53 = vmul.f32 %v3629_v5, %v1423_v52  ;;  %v1424_v38 = vmul.f32 %v3411_v55, %v920_v8  ;;  %v852_v8 = vadd.f32 %v3510_v24, %v3494_v37  ;;  %v960_v36 = vmax.f32 %v844_v34, 0.0 }
 0x11c   : > { %v696_v47 = vpop.f32.mrb[21].mxu0  ;;  %v3654_v56 = vadd.f32 %v1528_v3, %v3565_v19  ;;  %v961_v19 = vmax.f32 %v849_v18, 0.0  ;;  %v1529_v3 = vmul.f32 %v3629_v5, %v1426_v40  ;;  %v705_v55 = vadd.f32 %v2754_v15, %v3494_v37  ;;  %v3686_v58 = vpop.permute.xlu1 %1274 }
 0x11d   : > { %v2755_v29 = vpop.f32.mrb[22].mxu0  ;;  %v3668_v52 = vadd.f32 %v1526_v53, %v3572_v44  ;;  %v1527_v57 = vmul.f32 %v3629_v5, %v1424_v38  ;;  %v697_v32 = vadd.f32 %v3494_v37, %v696_v47  ;;  %4375 = vst [vmem:[#allocation25_spill] sm:$0xff] %v3686_v58  ;;  %v962_v58 = vmax.f32 %v852_v8, 0.0 }
 0x11e   : > { %v699_v45 = vpop.f32.mrb[23].mxu0  ;;  %v708_v9 = vadd.f32 %v2755_v29, %v3494_v37  ;;  %v3680_v44 = vadd.f32 %v1529_v3, %v3578_v7  ;;  %v925_v53 = vmax.f32 %v705_v55, 0.0  ;;  %v1465_v7 = vmul.f32 %v3526_v11, %v961_v19 }
 0x11f   : > { %v3683_v18 = vadd.f32 %v1527_v57, %v3580_v4  ;;  %v923_v40 = vmax.f32 %v697_v32, 0.0  ;;  %v700_v47 = vadd.f32 %v3494_v37, %v699_v45  ;;  %v3695_v4 = vpop.permute.xlu0 %1269  ;;  %v1463_v29 = vmul.f32 %v3487_v35, %v959_v12  ;;  %v3715_v35 = vld [vmem:[%s4351_s3 + $0x3] ss:$0 sm:$0xff] }
 0x120   : > { %v926_v24 = vmax.f32 %v708_v9, 0.0  ;;  %v1429_v3 = vmul.f32 %v3466_v21, %v925_v53 }
 0x121   : > { %v1427_v55 = vmul.f32 %v3458_v17, %v923_v40  ;;  %v924_v32 = vmax.f32 %v700_v47, 0.0 }
 0x122   : > { %v1430_v9 = vmul.f32 %v3464_v20, %v926_v24  ;;  %v1532_v6 = vmul.f32 %v3629_v5, %v1429_v3  ;;  %v3709_v20 = vld [vmem:[%s4351_s3 + $0x7] ss:$0 sm:$0xff] }
 0x123   : > { %v2758_v38 = vpop.f32.mrb[24].mxu0  ;;  %v1530_v19 = vmul.f32 %v3629_v5, %v1427_v55  ;;  %v1428_v53 = vmul.f32 %v3456_v16, %v924_v32  ;;  %v3720_v16 = vpop.permute.xlu1 %1284  ;;  %v3735_v32 = vmul.f32 %v3709_v20, %v1463_v29 }
 0x124   : > { %v712_v57 = vpop.f32.mrb[25].mxu0  ;;  %v721_v45 = vadd.f32 %v2758_v38, %v3494_v37  ;;  %v1533_v21 = vmul.f32 %v3629_v5, %v1430_v9  ;;  %v1540_v40 = vadd.f32 %v1532_v6, %v3601_v31  ;;  %v956_v38 = vmax.f32 %v3692_v43, 0.0  ;;  %v3729_v3 = vpop.permute.xlu0 %1279 }
 0x125   : > { %v2759_v15 = vpop.f32.mrb[26].mxu0  ;;  %v713_v12 = vadd.f32 %v3494_v37, %v712_v57  ;;  %v1538_v24 = vadd.f32 %v1530_v19, %v3606_v25  ;;  %v1531_v31 = vmul.f32 %v3629_v5, %v1428_v53  ;;  %v3732_v9 = vmul.f32 %v3709_v20, %v1465_v7 }
 0x126   : > { %v715_v11 = vpop.f32.mrb[27].mxu0  ;;  %v929_v17 = vmax.f32 %v721_v45, 0.0  ;;  %v724_v8 = vadd.f32 %v2759_v15, %v3494_v37  ;;  %v3724_v47 = vadd.f32 %v1533_v21, %v3621_v13  ;;  %v1466_v7 = vmul.f32 %v3519_v63, %v962_v58 }
 0x127   : > { %v716_v34 = vadd.f32 %v3494_v37, %v715_v11  ;;  %v927_v57 = vmax.f32 %v713_v12, 0.0  ;;  %v1539_v25 = vadd.f32 %v1531_v31, %v3633_v23  ;;  %v1464_v53 = vmul.f32 %v3481_v30, %v960_v36  ;;  %v1315_v63 = vpop.permute.xlu1 %1314 }
 0x128   : > { %v1433_v6 = vmul.f32 %v3425_v62, %v929_v17  ;;  %v930_v55 = vmax.f32 %v724_v8, 0.0  ;;  %v1310_v36 = vpop.permute.xlu0 %1309 }
 0x129   : > { %v928_v15 = vmax.f32 %v716_v34, 0.0  ;;  %v1431_v62 = vmul.f32 %v3421_v60, %v927_v57  ;;  %v3754_v34 = vadd.f32 %v3524_v10, %v3494_v37  ;;  %v3769_v10 = vmul.f32 %v3709_v20, %v1466_v7 }
 0x12a   : > { %v1549_v13 = vmul.f32 %v3715_v35, %v1433_v6  ;;  %v1434_v45 = vmul.f32 %v3423_v61, %v930_v55 }
 0x12b   : > { %v2762_v5 = vpop.f32.mrb[28].mxu0  ;;  %v1432_v11 = vmul.f32 %v3419_v59, %v928_v15  ;;  %v1547_v12 = vmul.f32 %v3715_v35, %v1431_v62  ;;  %v3773_v62 = vmul.f32 %v3709_v20, %v1464_v53 }
 0x12c   : > { %v737_v19 = vadd.f32 %v2762_v5, %v3494_v37  ;;  %v728_v21 = vpop.f32.mrb[29].mxu0  ;;  %v3746_v29 = vadd.f32 %v1549_v13, %v3654_v56  ;;  %v1550_v60 = vmul.f32 %v3715_v35, %v1434_v45  ;;  %v4376_v45 = vld [vmem:[#allocation18_spill] sm:$0xff] }
 0x12d   : > { %v729_v23 = vadd.f32 %v3494_v37, %v728_v21  ;;  %v2763_v17 = vpop.f32.mrb[30].mxu0  ;;  %v1548_v61 = vmul.f32 %v3715_v35, %v1432_v11  ;;  %v3759_v31 = vadd.f32 %v1547_v12, %v3668_v52  ;;  %v3777_v52 = vadd.f32 %v3494_v37, %v3544_v1  ;;  %v4378_v1 = vld [vmem:[#allocation21_spill] sm:$0xff] }
 0x12e   : > { %v933_v59 = vmax.f32 %v737_v19, 0.0  ;;  %v731_v8 = vpop.f32.mrb[31].mxu0  ;;  %v740_v56 = vadd.f32 %v2763_v17, %v3494_v37  ;;  %v3762_v6 = vadd.f32 %v1550_v60, %v3680_v44  ;;  %v3781_v44 = vadd.f32 %v3547_v33, %v3494_v37  ;;  %v4377_v19 = vld [vmem:[#allocation17_spill] sm:$0xff] }
 0x12f   : > { %v931_v30 = vmax.f32 %v729_v23, 0.0  ;;  %v732_v58 = vadd.f32 %v3494_v37, %v731_v8  ;;  %v3765_v57 = vadd.f32 %v1548_v61, %v3683_v18  ;;  %v3786_v18 = vadd.f32 %v3494_v37, %v3551_v28  ;;  %v1325_v28 = vpop.permute.xlu1 %1324 }
 0x130   : > { %v1437_v55 = vmul.f32 %v3504_v51, %v933_v59  ;;  %v934_v13 = vmax.f32 %v740_v56, 0.0  ;;  %v881_v53 = vadd.f32 %v4378_v1, %v3494_v37  ;;  %v873_v33 = vadd.f32 %v3494_v37, %v3576_v42  ;;  %v3805_v42 = vpop.permute.xlu0 %1319  ;;  %v4380_v1 = vld [vmem:[#allocation6_spill] sm:$0xff] }
 0x131   : > { %v1435_v15 = vmul.f32 %v3477_v26, %v931_v30  ;;  %v932_v5 = vmax.f32 %v732_v58, 0.0  ;;  %v965_v56 = vmax.f32 %v3754_v34, 0.0  ;;  %v963_v58 = vmax.f32 %v3777_v52, 0.0 }
 0x132   : > { %v1553_v51 = vmul.f32 %v3715_v35, %v1437_v55  ;;  %v1438_v11 = vmul.f32 %v4376_v45, %v934_v13  ;;  %v969_v45 = vmax.f32 %v881_v53, 0.0  ;;  %v4382_v53 = vmax.f32 %v3661_v48, 0.0 }
 0x133   : > { %v1551_v26 = vmul.f32 %v3715_v35, %v1435_v15  ;;  %v1436_v21 = vmul.f32 %v4377_v19, %v932_v5  ;;  %v2766_v7 = vpop.f32.mrb[32].mxu0 }
 0x134   : > { %v3795_v23 = vadd.f32 %v1553_v51, %v1540_v40  ;;  %v753_v17 = vadd.f32 %v2766_v7, %v3494_v37  ;;  %v744_v12 = vpop.f32.mrb[33].mxu0  ;;  %v1554_v61 = vmul.f32 %v3715_v35, %v1438_v11  ;;  %v4379_v11 = vld [vmem:[#allocation8_spill] sm:$0xff]  ;;  %v964_v7 = vmax.f32 %v3786_v18, 0.0 }
 0x135   : > { %v3798_v60 = vadd.f32 %v1551_v26, %v1538_v24  ;;  %v1552_v59 = vmul.f32 %v3715_v35, %v1436_v21  ;;  %v745_v8 = vadd.f32 %v3494_v37, %v744_v12  ;;  %v2767_v30 = vpop.f32.mrb[34].mxu0  ;;  %v3816_v35 = vld [vmem:[%s4351_s3 + $0x4] ss:$0 sm:$0xff]  ;;  %v966_v26 = vmax.f32 %v3781_v44, 0.0 }
 0x136   : > { %v937_v40 = vmax.f32 %v753_v17, 0.0  ;;  %v756_v55 = vadd.f32 %v2767_v30, %v3494_v37  ;;  %v747_v15 = vpop.f32.mrb[35].mxu0  ;;  %v3809_v24 = vadd.f32 %v1554_v61, %v3724_v47  ;;  %v967_v47 = vmax.f32 %v873_v33, 0.0  ;;  %v3833_v33 = vpop.permute.xlu1 %1354 }
 0x137   : > { %v3811_v13 = vadd.f32 %v1552_v59, %v1539_v25  ;;  %v935_v5 = vmax.f32 %v745_v8, 0.0  ;;  %v748_v51 = vadd.f32 %v3494_v37, %v747_v15  ;;  %v1460_v12 = vmul.f32 %v1315_v63, %v956_v38  ;;  %v4381_v8 = vld [vmem:[#allocation7_spill] sm:$0xff] }
 0x138   : > { %v1441_v19 = vmul.f32 %v4379_v11, %v937_v40  ;;  %v938_v21 = vmax.f32 %v756_v55, 0.0  ;;  %v884_v61 = vadd.f32 %v3582_v2, %v3494_v37  ;;  %v1459_v40 = vmul.f32 %v1310_v36, %v4382_v53  ;;  %v3838_v2 = vpop.permute.xlu0 %1349 }
 0x139   : > { %v1439_v25 = vmul.f32 %v4380_v1, %v935_v5  ;;  %v936_v17 = vmax.f32 %v748_v51, 0.0  ;;  %v876_v55 = vadd.f32 %v3494_v37, %v3586_v46  ;;  %v4383_v5 = vld [vmem:[#allocation5_spill] sm:$0xff]  ;;  %v1473_v63 = vmul.f32 %v3651_v27, %v969_v45  ;;  %v3859_v1 = vld [vmem:[%s4351_s3 + $0x8] ss:$0 sm:$0xff] }
 0x13a   : > { %v1570_v59 = vmul.f32 %v3816_v35, %v1441_v19  ;;  %v1442_v30 = vmul.f32 %v4381_v8, %v938_v21  ;;  %v1471_v46 = vmul.f32 %v3591_v50, %v967_v47  ;;  %v3849_v19 = vld [vmem:[%s4351_s3 + $0x6] ss:$0 sm:$0xff] }
 0x13b   : > { %v1568_v15 = vmul.f32 %v3816_v35, %v1439_v25  ;;  %v1440_v43 = vmul.f32 %v4383_v5, %v936_v17  ;;  %v2770_v38 = vpop.f32.mrb[36].mxu0  ;;  %v970_v25 = vmax.f32 %v884_v61, 0.0  ;;  %v4384_v5 = vmax.f32 %v3665_v49, 0.0 }
 0x13c   : > { %v3841_v51 = vadd.f32 %v1570_v59, %v3746_v29  ;;  %v1571_v48 = vmul.f32 %v3816_v35, %v1442_v30  ;;  %v769_v36 = vadd.f32 %v2770_v38, %v3494_v37  ;;  %v760_v11 = vpop.f32.mrb[37].mxu0  ;;  %v3876_v38 = vmul.f32 %v3859_v1, %v1473_v63  ;;  %v1360_v49 = vpop.permute.xlu0 %1359  ;;  %v4386_v63 = vld [vmem:[#allocation22_spill] sm:$0xff] }
 0x13d   : > { %v3852_v21 = vadd.f32 %v1568_v15, %v3759_v31  ;;  %v1569_v27 = vmul.f32 %v3816_v35, %v1440_v43  ;;  %v761_v29 = vadd.f32 %v3494_v37, %v760_v11  ;;  %v2771_v45 = vpop.f32.mrb[38].mxu0  ;;  %v968_v31 = vmax.f32 %v876_v55, 0.0 }
 0x13e   : > { %v3862_v50 = vadd.f32 %v1571_v48, %v3762_v6  ;;  %v941_v47 = vmax.f32 %v769_v36, 0.0  ;;  %v772_v17 = vadd.f32 %v2771_v45, %v3494_v37  ;;  %v763_v59 = vpop.f32.mrb[39].mxu0  ;;  %v3870_v15 = vmul.f32 %v3849_v19, %v1460_v12  ;;  %v4385_v48 = vld [vmem:[#allocation20_spill] sm:$0xff] }
 0x13f   : > { %v3866_v8 = vadd.f32 %v1569_v27, %v3765_v57  ;;  %v939_v30 = vmax.f32 %v761_v29, 0.0  ;;  %v764_v53 = vadd.f32 %v3494_v37, %v763_v59  ;;  %v1462_v61 = vmul.f32 %v1325_v28, %v4384_v5  ;;  %v1365_v57 = vpop.permute.xlu1 %1364 }
 0x140   : > { %v1445_v6 = vmul.f32 %v3618_v22, %v941_v47  ;;  %v942_v43 = vmax.f32 %v772_v17, 0.0  ;;  %v3879_v55 = vmul.f32 %v3849_v19, %v1459_v40  ;;  %v3883_v27 = vmul.f32 %v3859_v1, %v1471_v46  ;;  %v4388_v17 = vld [vmem:[#allocation19_spill] sm:$0xff] }
 0x141   : > { %v1443_v36 = vmul.f32 %v4385_v48, %v939_v30  ;;  %v940_v11 = vmax.f32 %v764_v53, 0.0  ;;  %v3886_v12 = vmul.f32 %v3648_v54, %v970_v25  ;;  %v3891_v29 = vmul.f32 %v4386_v63, %v968_v31 }
 0x142   : > { %v1574_v22 = vmul.f32 %v3816_v35, %v1445_v6  ;;  %v1446_v28 = vmul.f32 %v3613_v39, %v942_v43  ;;  %v4387_v40 = vmax.f32 %v3640_v0, 0.0  ;;  %v3899_v54 = vmul.f32 %v3849_v19, %v1462_v61  ;;  %v4389_v6 = vld [vmem:[#allocation23_spill] sm:$0xff] }
 0x143   : > { %v1572_v47 = vmul.f32 %v3816_v35, %v1443_v36  ;;  %v1444_v46 = vmul.f32 %v4388_v17, %v940_v11  ;;  %v2774_v59 = vpop.f32.mrb[40].mxu0  ;;  %v897_v0 = vadd.f32 %v3604_v14, %v3494_v37  ;;  %v892_v14 = vadd.f32 %v3494_v37, %v3631_v41  ;;  %v1390_v17 = vpop.permute.xlu0 %1389  ;;  %v4391_v41 = vld [vmem:[#allocation12_spill] sm:$0xff] }
 0x144   : > { %v1461_v45 = vmul.f32 %v3805_v42, %v4387_v40  ;;  %v3902_v25 = vadd.f32 %v1574_v22, %v3795_v23  ;;  %v1575_v39 = vmul.f32 %v3816_v35, %v1446_v28  ;;  %v785_v31 = vadd.f32 %v2774_v59, %v3494_v37  ;;  %v776_v30 = vpop.f32.mrb[41].mxu0  ;;  %v4390_v40 = vld [vmem:[#allocation24_spill] sm:$0xff] }
 0x145   : > { %v3909_v42 = vadd.f32 %v1572_v47, %v3798_v60  ;;  %v1573_v53 = vmul.f32 %v3816_v35, %v1444_v46  ;;  %v777_v5 = vadd.f32 %v3494_v37, %v776_v30  ;;  %v2775_v61 = vpop.f32.mrb[42].mxu0  ;;  %v889_v23 = vadd.f32 %v3494_v37, %v4389_v6  ;;  %v1395_v60 = vpop.permute.xlu1 %1394  ;;  %v3927_v35 = vld [vmem:[%s4351_s3 + $0x5] ss:$0 sm:$0xff] }
 0x146   : > { %v3916_v43 = vadd.f32 %v1575_v39, %v3809_v24  ;;  %v945_v48 = vmax.f32 %v785_v31, 0.0  ;;  %v788_v36 = vadd.f32 %v2775_v61, %v3494_v37  ;;  %v779_v11 = vpop.f32.mrb[43].mxu0  ;;  %v3931_v63 = vmul.f32 %v3849_v19, %v1461_v45  ;;  %v4392_v31 = vld [vmem:[#allocation10_spill] sm:$0xff]  ;;  %v4393_v6 = vld [vmem:[#allocation11_spill] sm:$0xff] }
 0x147   : > { %v3922_v22 = vadd.f32 %v1573_v53, %v3811_v13  ;;  %v943_v28 = vmax.f32 %v777_v5, 0.0  ;;  %v780_v24 = vadd.f32 %v3494_v37, %v779_v11  ;;  %v900_v47 = vadd.f32 %v4390_v40, %v3494_v37 }
 0x148   : > { %v1449_v46 = vmul.f32 %v4391_v41, %v945_v48  ;;  %v946_v59 = vmax.f32 %v788_v36, 0.0  ;;  %v1468_v13 = vmul.f32 %v3833_v33, %v964_v7  ;;  %v1467_v39 = vmul.f32 %v3838_v2, %v963_v58  ;;  %v4394_v7 = vld [vmem:[#allocation9_spill] sm:$0xff] }
 0x149   : > { %v1447_v30 = vmul.f32 %v4392_v31, %v943_v28  ;;  %v944_v53 = vmax.f32 %v780_v24, 0.0  ;;  %v973_v45 = vmax.f32 %v897_v0, 0.0  ;;  %v971_v5 = vmax.f32 %v889_v23, 0.0  ;;  %v1405_v44 = vpop.permute.xlu1 %1404 }
 0x14a   : > { %v1591_v61 = vmul.f32 %v3927_v35, %v1449_v46  ;;  %v1450_v11 = vmul.f32 %v4393_v6, %v946_v59  ;;  %v1470_v48 = vmul.f32 %v1365_v57, %v966_v26  ;;  %v972_v36 = vmax.f32 %v892_v14, 0.0 }
 0x14b   : > { %v1589_v18 = vmul.f32 %v3927_v35, %v1447_v30  ;;  %v1448_v33 = vmul.f32 %v4394_v7, %v944_v53  ;;  %v2778_v52 = vpop.f32.mrb[44].mxu0  ;;  %v974_v40 = vmax.f32 %v900_v47, 0.0  ;;  %v1469_v28 = vmul.f32 %v1360_v49, %v965_v56 }
 0x14c   : > { %v3950_v58 = vadd.f32 %v1591_v61, %v3841_v51  ;;  %v1592_v2 = vmul.f32 %v3927_v35, %v1450_v11  ;;  %v801_v0 = vadd.f32 %v2778_v52, %v3494_v37  ;;  %v792_v23 = vpop.f32.mrb[45].mxu0  ;;  %v1475_v47 = vmul.f32 %v1390_v17, %v971_v5  ;;  %v1400_v51 = vpop.permute.xlu0 %1399 }
 0x14d   : > { %v3957_v26 = vadd.f32 %v1589_v18, %v3852_v21  ;;  %v1590_v57 = vmul.f32 %v3927_v35, %v1448_v33  ;;  %v793_v14 = vadd.f32 %v3494_v37, %v792_v23  ;;  %v2779_v24 = vpop.f32.mrb[46].mxu0  ;;  %v1476_v34 = vmul.f32 %v1395_v60, %v972_v36  ;;  %v4395_v33 = vld [vmem:[#allocation25_spill] sm:$0xff] }
 0x14e   : > { %v3962_v41 = vadd.f32 %v1592_v2, %v3862_v50  ;;  %v949_v46 = vmax.f32 %v801_v0, 0.0  ;;  %v804_v59 = vadd.f32 %v2779_v24, %v3494_v37  ;;  %v795_v31 = vpop.f32.mrb[47].mxu0  ;;  %v1636_v30 = vmul.f32 %v3709_v20, %v1468_v13 }
 0x14f   : > { %v3966_v56 = vadd.f32 %v1590_v57, %v3866_v8  ;;  %v947_v21 = vmax.f32 %v793_v14, 0.0  ;;  %v796_v49 = vadd.f32 %v3494_v37, %v795_v31  ;;  %v1478_v53 = vmul.f32 %v1405_v44, %v974_v40  ;;  %v4396_v31 = vld [vmem:[#allocation16_spill] sm:$0xff] }
 0x150   : > { %v1453_v17 = vmul.f32 %v3729_v3, %v949_v46  ;;  %v950_v5 = vmax.f32 %v804_v59, 0.0  ;;  %v1635_v50 = vmul.f32 %v3709_v20, %v1467_v39  ;;  %v1477_v61 = vmul.f32 %v1400_v51, %v973_v45 }
 0x151   : > { %v1451_v6 = vmul.f32 %v3695_v4, %v947_v21  ;;  %v948_v11 = vmax.f32 %v796_v49, 0.0  ;;  %v1638_v60 = vmul.f32 %v3709_v20, %v1470_v48  ;;  %v1637_v8 = vmul.f32 %v3709_v20, %v1469_v28  ;;  %v2621_v49 = vld [vmem:[%s4351_s3 + $0x1c] ss:$0 sm:$0xff] }
 0x152   : > { %v1595_v36 = vmul.f32 %v3927_v35, %v1453_v17  ;;  %v1454_v18 = vmul.f32 %v3720_v16, %v950_v5  ;;  %v1657_v13 = vmul.f32 %v3859_v1, %v1476_v34  ;;  %v1656_v7 = vmul.f32 %v3859_v1, %v1475_v47 }
 0x153   : > { %v1593_v3 = vmul.f32 %v3927_v35, %v1451_v6  ;;  %v1452_v39 = vmul.f32 %v4395_v33, %v948_v11  ;;  %v2782_v45 = vpop.f32.mrb[48].mxu0  ;;  %v1659_v4 = vmul.f32 %v3859_v1, %v1478_v53  ;;  %v1658_v16 = vmul.f32 %v3859_v1, %v1477_v61  ;;  %v4397_v53 = vld [vmem:[#allocation14_spill] sm:$0xff] }
 0x154   : > { %v1603_v52 = vadd.f32 %v1595_v36, %v3902_v25  ;;  %v1596_v48 = vmul.f32 %v3927_v35, %v1454_v18  ;;  %v817_v20 = vadd.f32 %v2782_v45, %v3494_v37  ;;  %v808_v40 = vpop.f32.mrb[49].mxu0 }
 0x155   : > { %v1601_v2 = vadd.f32 %v1593_v3, %v3909_v42  ;;  %v1594_v0 = vmul.f32 %v3927_v35, %v1452_v39  ;;  %v809_v23 = vadd.f32 %v3494_v37, %v808_v40  ;;  %v2783_v28 = vpop.f32.mrb[50].mxu0 }
 0x156   : > { %v1624_v44 = vadd.f32 %v3931_v63, %v1603_v52  ;;  %v1604_v57 = vadd.f32 %v1596_v48, %v3916_v43  ;;  %v953_v14 = vmax.f32 %v817_v20, 0.0  ;;  %v820_v25 = vadd.f32 %v2783_v28, %v3494_v37  ;;  %v811_v24 = vpop.f32.mrb[51].mxu0 }
 0x157   : > { %v1622_v47 = vadd.f32 %v3879_v55, %v1601_v2  ;;  %v1602_v51 = vadd.f32 %v1594_v0, %v3922_v22  ;;  %v951_v46 = vmax.f32 %v809_v23, 0.0  ;;  %v812_v42 = vadd.f32 %v3494_v37, %v811_v24  ;;  %v4398_v37 = vld [vmem:[#allocation15_spill] sm:$0xff] }
 0x158   : > { %v1645_v59 = vadd.f32 %v1637_v8, %v1624_v44  ;;  %v1625_v35 = vadd.f32 %v3899_v54, %v1604_v57  ;;  %v1457_v34 = vmul.f32 %v4396_v31, %v953_v14  ;;  %v954_v21 = vmax.f32 %v820_v25, 0.0  ;;  %v4399_v8 = vld [vmem:[#allocation13_spill] sm:$0xff] }
 0x159   : > { %v1643_v63 = vadd.f32 %v1635_v50, %v1622_v47  ;;  %v1623_v43 = vadd.f32 %v3870_v15, %v1602_v51  ;;  %v1455_v55 = vmul.f32 %v4397_v53, %v951_v46  ;;  %v952_v17 = vmax.f32 %v812_v42, 0.0  ;;  %v4052_v53 = vld [vmem:[%s4351_s3 + $0x1d] ss:$0 sm:$0xff] }
 0x15a   : > { %v1646_v22 = vadd.f32 %v1638_v60, %v1625_v35  ;;  %v1612_v5 = vmul.f32 %v3849_v19, %v1457_v34  ;;  %v1458_v61 = vmul.f32 %v4398_v37, %v954_v21  ;;  %v1666_v6 = vadd.f32 %v1658_v16, %v1645_v59  ;;  %v2939_v35 = vld [vmem:[%s4350_s2 + $0x20] sm:$0xff]   ;;  %v2940_v34 = vld [vmem:[%s4350_s2 + $0x28] sm:$0xff]   ;;  %v2941_v21 = vld [vmem:[%s4350_s2 + $0x30] sm:$0xff]  }
 0x15b   : > { %v1644_v54 = vadd.f32 %v1636_v30, %v1623_v43  ;;  %v1610_v11 = vmul.f32 %v3849_v19, %v1455_v55  ;;  %v1456_v50 = vmul.f32 %v4399_v8, %v952_v17  ;;  %v1664_v36 = vadd.f32 %v1656_v7, %v1643_v63  ;;  %v2942_v63 = vld [vmem:[%s4350_s2 + $0x38] sm:$0xff]  }
 0x15c   : > { %v1620_v15 = vadd.f32 %v1612_v5, %v3950_v58  ;;  %v1613_v18 = vmul.f32 %v3849_v19, %v1458_v61  ;;  %v1667_v3 = vadd.f32 %v1659_v4, %v1646_v22  ;;  %v1679_v33 = vadd.f32 %v2621_v49, %v1666_v6 }
 0x15d   : > { %v1618_v39 = vadd.f32 %v1610_v11, %v3957_v26  ;;  %v1611_v60 = vmul.f32 %v3849_v19, %v1456_v50  ;;  %v1665_v45 = vadd.f32 %v1657_v13, %v1644_v54  ;;  %v1677_v52 = vadd.f32 %v2621_v49, %v1664_v36 }
 0x15e   : > { %v1655_v30 = vmul.f32 %v3859_v1, %v3886_v12  ;;  %v1641_v48 = vadd.f32 %v3732_v9, %v1620_v15  ;;  %v1621_v20 = vadd.f32 %v1613_v18, %v3962_v41  ;;  %v1680_v7 = vadd.f32 %v2621_v49, %v1667_v3 }
 0x15f   : > { %v1653_v58 = vmul.f32 %v3859_v1, %v3891_v29  ;;  %v1639_v4 = vadd.f32 %v3735_v32, %v1618_v39  ;;  %v1619_v40 = vadd.f32 %v1611_v60, %v3966_v56  ;;  %v1678_v26 = vadd.f32 %v2621_v49, %v1665_v45  ;;  %v2633_v45 = vld [vmem:[%s4351_s3 + $0xd] ss:$0 sm:$0xff] }
 0x160   : > { %v1662_v19 = vadd.f32 %v3876_v38, %v1641_v48  ;;  %v1642_v13 = vadd.f32 %v3769_v10, %v1621_v20  ;;  %v1687_v16 = vmax.f32 %v1679_v33, 0.0  ;;  %v1688_v2 = vmax.f32 %v1680_v7, 0.0  ;;  %v2634_v33 = vld [vmem:[%s4351_s3 + $0xe] ss:$0 sm:$0xff]  ;;  %v2632_v48 = vld [vmem:[%s4351_s3 + $0xc] ss:$0 sm:$0xff] }
 0x161   : > { %v1660_v12 = vadd.f32 %v3883_v27, %v1639_v4  ;;  %v1640_v9 = vadd.f32 %v3773_v62, %v1619_v40  ;;  %v1685_v41 = vmax.f32 %v1677_v52, 0.0  ;;  %v1686_v0 = vmax.f32 %v1678_v26, 0.0 }
 0x162   : > { %v1675_v23 = vadd.f32 %v2621_v49, %v1662_v19  ;;  %v1663_v28 = vadd.f32 %v1655_v30, %v1642_v13  ;;  %v1692_v1 = vpack.c.bf16 %v1688_v2, %v1687_v16  ;;  %v1799_v62 = vlaneseq }
 0x163   : > { %v1661_v29 = vadd.f32 %v1653_v58, %v1640_v9  ;;  %v1673_v32 = vadd.f32 %v2621_v49, %v1660_v12  ;;  %v1691_v44 = vpack.c.bf16 %v1686_v0, %v1685_v41  ;;  %v3016_v42 = vmov 1.0  }
 0x164   : > { %v1676_v56 = vadd.f32 %v2621_v49, %v1663_v28  ;;  %v1683_v14 = vmax.f32 %v1675_v23, 0.0  ;;  %v1800_v27 = vshrl.u32 %v1799_v62, 7  ;;  %v3017_v31 = vmov 0.0  }
 0x165   : > { %v1674_v57 = vadd.f32 %v2621_v49, %v1661_v29  ;;  %v1681_v25 = vmax.f32 %v1673_v32, 0.0  ;;  %2816 = vmatprep.subr.bf16.mxu1 %v3017_v31 }
 0x166   : > { %v1684_v38 = vmax.f32 %v1676_v56, 0.0  ;;  %v1801_v51 = vadd.s32 8, %v1800_v27  ;;  %v1802_v43 = vand.u32 3, %v1800_v27 }
 0x167   : > { %v1682_v10 = vmax.f32 %v1674_v57, 0.0 }
 0x168   : > { %v1690_v24 = vpack.c.bf16 %v1684_v38, %v1683_v14  ;;  %v1803_v46 = vand.u32 3, %v1801_v51  ;;  %vm1808_vm3 = vcmp.eq.s32.totalorder %v1802_v43, 3  ;;  %vm1804_vm4 = vcmp.eq.s32.totalorder %v1802_v43, 0 }
 0x169   : > { %v1689_v47 = vpack.c.bf16 %v1682_v10, %v1681_v25  ;;  %v4047_v49 = vsel %vm1808_vm3, 0.0, %v3016_v42  ;;  %v4054_v17 = vsel %vm1804_vm4, 0.0, %v3016_v42 }
 0x16a   : > { %vm1809_vm1 = vcmp.eq.s32.totalorder %v1803_v46, 3  ;;  %vm1805_vm5 = vcmp.eq.s32.totalorder %v1803_v46, 0  ;;  %v4061_v11 = vrot.slane %v4054_v17, 4 }
 0x16b   : > { %2808 = vmatprep.mubr.msk.bf16.mxu1 %vm473_vm0, %v1689_v47  ;;  %v4026_v59 = vsel %vm1809_vm1, 0.0, %v3016_v42  ;;  %v4056_v22 = vsel %vm1805_vm5, 0.0, %v3016_v42 }
 0x16c   : > { %2809 = vmatmul.mubr.msk.bf16.vlgmr.msra.gmra.mrb[20].mxu1 %vm473_vm0, %v1690_v24  ;;  %v4065_v50 = vrot.slane %v4056_v22, 4 }
 0x16d   : > { %2812 = vmatprep.mubr.msk.bf16.mxu1 %vm473_vm0, %v1691_v44  ;;  %2817 = vmatpush3.bf16.msra.mxu1 %v2939_v35 }
 0x16e   : > { %2818 = vmatprep.subr.bf16.mxu1 %v3017_v31  ;;  %v4081_v7 = vsel %vm1903_vm7, %v4061_v11, %v4065_v50 }
 0x171   : > { %2819 = vmatpush3.bf16.msra.mxu1 %v2940_v34 }
 0x172   : > { %2820 = vmatprep.subr.bf16.mxu1 %v3017_v31 }
 0x174   : > { %2813 = vmatmul.mubr.msk.bf16.gmra.mrb[24].mxu1 %vm473_vm0, %v1692_v1 }
 0x175   : > { %2821 = vmatpush3.bf16.msra.mxu1 %v2941_v21  ;;  %2824 = vmatprep.mubr.msk.bf16.mxu1 %vm3018_vm2, %v3017_v31 }
 0x176   : > { %2822 = vmatprep.subr.bf16.mxu1 %v3017_v31 }
 0x179   : > { %2823 = vmatpush3.bf16.msra.mxu1 %v2942_v63 }
 0x17a   : > { %2828 = vmatprep.subr.bf16.mxu1 %v3017_v31 }
 0x23f   : > { %v2810_v55 = vpop.f32.mrb[20].mxu1 }
 0x240   : > { %v1769_v5 = vadd.f32 %v2810_v55, %v4052_v53  ;;  %v1760_v37 = vpop.f32.mrb[21].mxu1 }
 0x241   : > { %v1761_v61 = vadd.f32 %v4052_v53, %v1760_v37  ;;  %v2811_v6 = vpop.f32.mrb[22].mxu1 }
 0x242   : > { %v1793_v54 = vmax.f32 %v1769_v5, 0.0  ;;  %v1772_v8 = vadd.f32 %v2811_v6, %v4052_v53  ;;  %v1763_v36 = vpop.f32.mrb[23].mxu1 }
 0x243   : > { %v1791_v15 = vmax.f32 %v1761_v61, 0.0  ;;  %v1764_v18 = vadd.f32 %v4052_v53, %v1763_v36  ;;  %v2631_v61 = vld [vmem:[%s4351_s3 + $0xb] ss:$0 sm:$0xff]  ;;  %v2637_v36 = vld [vmem:[%s4351_s3 + $0x11] ss:$0 sm:$0xff] }
 0x244   : > { %v1824_v3 = vrot.slane %v1793_v54, 3  ;;  %v1794_v39 = vmax.f32 %v1772_v8, 0.0 }
 0x245   : > { %v1815_v60 = vrot.slane %v1791_v15, 3  ;;  %v1792_v52 = vmax.f32 %v1764_v18, 0.0 }
 0x246   : > { %v1830_v30 = vsel %vm1814_vm6, 0.0, %v1824_v3  ;;  %v1825_v20 = vrot.slane %v1794_v39, 3 }
 0x247   : > { %v1910_v58 = vmul.f32 %v4061_v11, %v1830_v30  ;;  %v1959_v4 = vmul.f32 %v2634_v33, %v1830_v30  ;;  %v1821_v40 = vsel %vm1814_vm6, 0.0, %v1815_v60  ;;  %v1816_v26 = vrot.slane %v1792_v52, 3  ;;  %v2814_v19 = vpop.f32.mrb[24].mxu1 }
 0x248   : > { %v1938_v13 = vmul.f32 %v2633_v45, %v1821_v40  ;;  %v1826_v16 = vsel %vm1814_vm6, %v1824_v3, %v1825_v20  ;;  %v1912_v2 = vmul.f32 %v4065_v50, %v1825_v20  ;;  %v1961_v12 = vmul.f32 %v2634_v33, %v1825_v20  ;;  %v1776_v9 = vpop.f32.mrb[25].mxu1  ;;  %v2629_v3 = vld [vmem:[%s4351_s3 + $0x9] ss:$0 sm:$0xff] }
 0x249   : > { %v1918_v41 = vmul.f32 %v2632_v48, %v1910_v58  ;;  %v1965_v0 = vrot.slane %v1959_v4, 5  ;;  %v1911_v23 = vmul.f32 %v4081_v7, %v1826_v16  ;;  %v1960_v28 = vmul.f32 %v2634_v33, %v1826_v16  ;;  %v2815_v1 = vpop.f32.mrb[26].mxu1  ;;  %v2630_v33 = vld [vmem:[%s4351_s3 + $0xa] ss:$0 sm:$0xff] }
 0x24a   : > { %v1945_v29 = vrot.slane %v1938_v13, 5  ;;  %v1920_v32 = vmul.f32 %v2632_v48, %v1912_v2  ;;  %v1968_v44 = vrot.slane %v1961_v12, 5  ;;  %v1817_v56 = vsel %vm1814_vm6, %v1815_v60, %v1816_v26  ;;  %v1779_v57 = vpop.f32.mrb[27].mxu1  ;;  %v2635_v60 = vld [vmem:[%s4351_s3 + $0xf] ss:$0 sm:$0xff] }
 0x24b   : > { %v1924_v14 = vrot.slane %v1918_v41, 4  ;;  %v1919_v38 = vmul.f32 %v2632_v48, %v1911_v23  ;;  %v1966_v25 = vrot.slane %v1960_v28, 5  ;;  %v1939_v10 = vmul.f32 %v2633_v45, %v1817_v56 }
 0x24c   : > { %v1927_v24 = vrot.slane %v1920_v32, 4  ;;  %v1940_v47 = vmul.f32 %v2633_v45, %v1816_v26  ;;  %v1785_v62 = vadd.f32 %v2814_v19, %v4052_v53  ;;  %v1777_v27 = vadd.f32 %v4052_v53, %v1776_v9 }
 0x24d   : > { %v1925_v51 = vrot.slane %v1919_v38, 4  ;;  %v4092_v46 = vsel %vm1944_vm8, %v1965_v0, %v1966_v25  ;;  %v4095_v42 = vsel %vm1944_vm8, %v1966_v25, %v1968_v44  ;;  %v1946_v35 = vrot.slane %v1939_v10, 5 }
 0x24e   : > { %v1948_v34 = vrot.slane %v1940_v47, 5  ;;  %v1797_v21 = vmax.f32 %v1785_v62, 0.0  ;;  %v1795_v63 = vmax.f32 %v1777_v27, 0.0  ;;  %v1788_v43 = vadd.f32 %v2815_v1, %v4052_v53 }
 0x24f   : > { %v4099_v55 = vsel %vm1903_vm7, %v1924_v14, %v1925_v51  ;;  %v4102_v5 = vsel %vm1903_vm7, %v1925_v51, %v1927_v24  ;;  %v4105_v37 = vsel %vm1944_vm8, %v1945_v29, %v1946_v35  ;;  %v1780_v6 = vadd.f32 %v4052_v53, %v1779_v57  ;;  %v2636_v53 = vld [vmem:[%s4351_s3 + $0x10] ss:$0 sm:$0xff] }
 0x250   : > { %v4112_v54 = vsel %vm1944_vm8, %v1946_v35, %v1948_v34  ;;  %v1842_v8 = vrot.slane %v1797_v21, 3  ;;  %v1833_v15 = vrot.slane %v1795_v63, 3  ;;  %v1798_v18 = vmax.f32 %v1788_v43, 0.0 }
 0x251   : > { %v1796_v30 = vmax.f32 %v1780_v6, 0.0 }
 0x252   : > { %v1848_v39 = vsel %vm1814_vm6, 0.0, %v1842_v8  ;;  %v1839_v45 = vsel %vm1814_vm6, 0.0, %v1833_v15  ;;  %v1843_v52 = vrot.slane %v1798_v18, 3 }
 0x253   : > { %v1849_v48 = vmul.f32 %v1848_v39, %v4054_v17  ;;  %v1886_v20 = vmul.f32 %v2631_v61, %v1848_v39  ;;  %v1974_v58 = vmul.f32 %v4061_v11, %v1848_v39  ;;  %v2022_v4 = vmul.f32 %v2637_v36, %v1848_v39 }
 0x254   : > { %v1865_v40 = vmul.f32 %v2630_v33, %v1839_v45  ;;  %v2002_v26 = vmul.f32 %v2636_v53, %v1839_v45  ;;  %v1844_v19 = vsel %vm1814_vm6, %v1842_v8, %v1843_v52  ;;  %v1888_v13 = vmul.f32 %v2631_v61, %v1843_v52 }
 0x255   : > { %v1856_v16 = vmul.f32 %v2629_v3, %v1849_v48  ;;  %v1982_v2 = vmul.f32 %v2635_v60, %v1974_v58  ;;  %v1892_v12 = vrot.slane %v1886_v20, 1  ;;  %v2028_v9 = vrot.slane %v2022_v4, 5 }
 0x256   : > { %v1872_v41 = vrot.slane %v1865_v40, 1  ;;  %v1887_v0 = vmul.f32 %v2631_v61, %v1844_v19  ;;  %v2008_v23 = vrot.slane %v2002_v26, 5  ;;  %v1895_v28 = vrot.slane %v1888_v13, 1 }
 0x257   : > { %v1975_v1 = vmul.f32 %v4081_v7, %v1844_v19  ;;  %v1976_v29 = vmul.f32 %v4065_v50, %v1843_v52  ;;  %v2023_v44 = vmul.f32 %v2637_v36, %v1844_v19  ;;  %v2024_v56 = vmul.f32 %v2637_v36, %v1843_v52 }
 0x258   : > { %v1893_v32 = vrot.slane %v1887_v0, 1  ;;  %v1834_v57 = vrot.slane %v1796_v30, 3  ;;  %v1988_v14 = vrot.slane %v1982_v2, 4  ;;  %v1850_v38 = vmul.f32 %v1844_v19, %v4056_v22 }
 0x259   : > { %v1983_v25 = vmul.f32 %v2635_v60, %v1975_v1  ;;  %v1984_v10 = vmul.f32 %v2635_v60, %v1976_v29  ;;  %v2029_v47 = vrot.slane %v2023_v44, 5  ;;  %v2031_v62 = vrot.slane %v2024_v56, 5 }
 0x25a   : > { %v1896_v24 = vsel %vm1871_vm9, %v1893_v32, %v1895_v28  ;;  %v1835_v27 = vsel %vm1814_vm6, %v1833_v15, %v1834_v57  ;;  %v1867_v21 = vmul.f32 %v2630_v33, %v1834_v57  ;;  %v1894_v43 = vsel %vm1871_vm9, %v1892_v12, %v1893_v32 }
 0x25b   : > { %v1989_v51 = vrot.slane %v1983_v25, 4  ;;  %v1991_v35 = vrot.slane %v1984_v10, 4  ;;  %v1866_v34 = vmul.f32 %v2630_v33, %v1835_v27  ;;  %v2032_v63 = vsel %vm1944_vm8, %v2029_v47, %v2031_v62  ;;  %v2946_v25 = vld [vmem:[%s4350_s2 + $0x58] sm:$0xff]   ;;  %v2947_v10 = vld [vmem:[%s4350_s2 + $0x60] sm:$0xff]  }
 0x25c   : > { %v2003_v61 = vmul.f32 %v2636_v53, %v1835_v27  ;;  %v2004_v6 = vmul.f32 %v2636_v53, %v1834_v57  ;;  %v1875_v36 = vrot.slane %v1867_v21, 1  ;;  %v1857_v60 = vmul.f32 %v2629_v3, %v1850_v38  ;;  %v2945_v38 = vld [vmem:[%s4350_s2 + $0x50] sm:$0xff]   ;;  %v2950_v62 = vld [vmem:[%s4350_s2 + $0x78] sm:$0xff]  }
 0x25d   : > { %v1873_v8 = vrot.slane %v1866_v34, 1  ;;  %v1990_v18 = vsel %vm1903_vm7, %v1988_v14, %v1989_v51  ;;  %v1992_v39 = vsel %vm1903_vm7, %v1989_v51, %v1991_v35  ;;  %v2030_v15 = vsel %vm1944_vm8, %v2028_v9, %v2029_v47  ;;  %v2944_v14 = vld [vmem:[%s4350_s2 + $0x48] sm:$0xff]   ;;  %v2949_v47 = vld [vmem:[%s4350_s2 + $0x70] sm:$0xff]   ;;  %v2639_v27 = vld [vmem:[%s4351_s3 + $0x1f] ss:$0 sm:$0xff] }
 0x25e   : > { %v2009_v45 = vrot.slane %v2003_v61, 5  ;;  %v2011_v52 = vrot.slane %v2004_v6, 5  ;;  %v2249_v32 = vrot.slane %v4026_v59, 2  ;;  %v4165_v44 = vrot.slane %v4026_v59, 6  ;;  %v4214_v61 = vld [vmem:[%s4351_s3 + $0x19] ss:$0 sm:$0xff] }
 0x25f   : > { %v1874_v30 = vsel %vm1871_vm9, %v1872_v41, %v1873_v8  ;;  %v1876_v33 = vsel %vm1871_vm9, %v1873_v8, %v1875_v36 }
 0x260   : > { %v1879_v48 = vadd.f32 %v1874_v30, %v1856_v16  ;;  %v1880_v20 = vadd.f32 %v1876_v33, %v1857_v60  ;;  %v2010_v58 = vsel %vm1944_vm8, %v2008_v23, %v2009_v45  ;;  %v2012_v53 = vsel %vm1944_vm8, %v2009_v45, %v2011_v52  ;;  %v2638_v23 = vld [vmem:[%s4351_s3 + $0x1e] ss:$0 sm:$0xff]  ;;  %v2647_v52 = vld [vmem:[%s4351_s3 + $0x14] ss:$0 sm:$0xff]  ;;  %v4233_v30 = vld [vmem:[%s4351_s3 + $0x1a] ss:$0 sm:$0xff] }
 0x261   : > { %v2310_v60 = vmul.f32 0.0, %v4165_v44 }
 0x262   : > { %v1899_v4 = vadd.f32 %v1894_v43, %v1879_v48  ;;  %v1900_v40 = vadd.f32 %v1896_v24, %v1880_v20  ;;  %v2948_v24 = vld [vmem:[%s4350_s2 + $0x68] sm:$0xff]   ;;  %v2645_v48 = vld [vmem:[%s4351_s3 + $0x12] ss:$0 sm:$0xff] }
 0x264   : > { %v1931_v26 = vadd.f32 %v4099_v55, %v1899_v4  ;;  %v1932_v3 = vadd.f32 %v4102_v5, %v1900_v40  ;;  %v2648_v4 = vld [vmem:[%s4351_s3 + $0x15] ss:$0 sm:$0xff] }
 0x266   : > { %v1952_v19 = vadd.f32 %v4105_v37, %v1931_v26  ;;  %v1953_v13 = vadd.f32 %v4112_v54, %v1932_v3 }
 0x268   : > { %v1972_v2 = vadd.f32 %v4092_v46, %v1952_v19  ;;  %v1973_v12 = vadd.f32 %v4095_v42, %v1953_v13  ;;  %v4160_v46 = vrot.slane %v4047_v49, 6  ;;  %v2248_v42 = vrot.slane %v4047_v49, 2  ;;  %v2943_v49 = vld [vmem:[%s4350_s2 + $0x40] sm:$0xff]  }
 0x26a   : > { %v1995_v16 = vadd.f32 %v1990_v18, %v1972_v2  ;;  %v1996_v9 = vadd.f32 %v1992_v39, %v1973_v12  ;;  %v4170_v56 = vsel %vm2195_vm11, %v2248_v42, %v2249_v32  ;;  %v4175_v57 = vsel %vm2174_vm12, %v4160_v46, %v4165_v44  ;;  %v2649_v18 = vld [vmem:[%s4351_s3 + $0x16] ss:$0 sm:$0xff]  ;;  %v2650_v2 = vld [vmem:[%s4351_s3 + $0x17] ss:$0 sm:$0xff] }
 0x26b   : > { %v4223_v39 = vmul.f32 0.0, %v4214_v61 }
 0x26c   : > { %v2015_v41 = vadd.f32 %v2010_v58, %v1995_v16  ;;  %v2016_v0 = vadd.f32 %v2012_v53, %v1996_v9 }
 0x26d   : > { %v2302_v12 = vrot.slane %v4223_v39, 1  ;;  %v2655_v39 = vld [vmem:[%s4351_s3 + $0x21] ss:$0 sm:$0xff] }
 0x26e   : > { %v2035_v28 = vadd.f32 %v2030_v15, %v2015_v41  ;;  %v2036_v55 = vadd.f32 %v2032_v63, %v2016_v0 }
 0x270   : > { %v2042_v1 = vadd.f32 %v2638_v23, %v2035_v28  ;;  %v2043_v5 = vadd.f32 %v2638_v23, %v2036_v55 }
 0x272   : > { %v2044_v29 = vmax.f32 %v2042_v1, 0.0  ;;  %v2045_v37 = vmax.f32 %v2043_v5, 0.0 }
 0x274   : > { %v2046_v54 = vpack.c.bf16 %v2045_v37, %v2044_v29 }
 0x276   : > { %2825 = vmatmul.mubr.msk.bf16.vlgmr.msra.gmra.mrb[28].mxu1 %vm2084_vm10, %v2046_v54 }
 0x277   : > { %2844 = vmatprep.mubr.msk.bf16.mxu1 %vm3018_vm2, %v3017_v31  ;;  %2829 = vmatpush3.bf16.msra.mxu1 %v2943_v49 }
 0x278   : > { %2830 = vmatprep.subr.bf16.mxu1 %v3017_v31 }
 0x27b   : > { %2831 = vmatpush3.bf16.msra.mxu1 %v2944_v14 }
 0x27c   : > { %2832 = vmatprep.subr.bf16.mxu1 %v3017_v31 }
 0x27f   : > { %2833 = vmatpush3.bf16.msra.mxu1 %v2945_v38 }
 0x280   : > { %2834 = vmatprep.subr.bf16.mxu1 %v3017_v31 }
 0x283   : > { %2835 = vmatpush3.bf16.msra.mxu1 %v2946_v25 }
 0x284   : > { %2836 = vmatprep.subr.bf16.mxu1 %v3017_v31 }
 0x287   : > { %2837 = vmatpush3.bf16.msra.mxu1 %v2947_v10 }
 0x288   : > { %2838 = vmatprep.subr.bf16.mxu1 %v3017_v31 }
 0x28b   : > { %2839 = vmatpush3.bf16.msra.mxu1 %v2948_v24 }
 0x28c   : > { %2840 = vmatprep.subr.bf16.mxu1 %v3017_v31 }
 0x28f   : > { %2841 = vmatpush3.bf16.msra.mxu1 %v2949_v47 }
 0x290   : > { %2842 = vmatprep.subr.bf16.mxu1 %v3017_v31  ;;  %v2646_v31 = vld [vmem:[%s4351_s3 + $0x13] ss:$0 sm:$0xff] }
 0x293   : > { %2843 = vmatpush3.bf16.msra.mxu1 %v2950_v62 }
 0x349   : > { %v2122_v51 = vpop.f32.mrb[28].mxu1 }
 0x34a   : > { %v2123_v35 = vadd.f32 %v2639_v27, %v2122_v51  ;;  %v2826_v34 = vpop.f32.mrb[29].mxu1 }
 0x34b   : > { %v2125_v21 = vpop.f32.mrb[30].mxu1 }
 0x34c   : > { %v2129_v63 = vmax.f32 %v2123_v35, 0.0  ;;  %v2126_v43 = vadd.f32 %v2639_v27, %v2125_v21  ;;  %v2827_v6 = vpop.f32.mrb[31].mxu1 }
 0x34e   : > { %v2133_v8 = vrot.slane %v2129_v63, 3  ;;  %v2130_v36 = vmax.f32 %v2126_v43, 0.0 }
 0x350   : > { %v2139_v45 = vsel %vm1814_vm6, 0.0, %v2133_v8  ;;  %v2134_v15 = vrot.slane %v2130_v36, 3 }
 0x351   : > { %v2141_v33 = vmul.f32 %v2139_v45, %v4054_v17  ;;  %v2157_v20 = vmul.f32 %v2646_v31, %v2139_v45  ;;  %v2181_v58 = vmul.f32 %v4160_v46, %v2139_v45  ;;  %v2205_v53 = vmul.f32 %v2139_v45, %v4061_v11 }
 0x352   : > { %v4244_v40 = vmul.f32 %v2649_v18, %v2139_v45  ;;  %v2254_v26 = vmul.f32 %v2248_v42, %v2139_v45  ;;  %v2135_v3 = vsel %vm1814_vm6, %v2133_v8, %v2134_v15  ;;  %v2140_v19 = vsel %vm1814_vm6, %v2134_v15, 0.0 }
 0x353   : > { %v2189_v13 = vmul.f32 %v2647_v52, %v2181_v58  ;;  %v4253_v11 = vmul.f32 %v4233_v30, %v2310_v60  ;;  %v2148_v16 = vmul.f32 %v2645_v48, %v2141_v33  ;;  %v2213_v9 = vmul.f32 %v2648_v4, %v2205_v53 }
 0x354   : > { %v2142_v41 = vmul.f32 %v2135_v3, %v4056_v22  ;;  %v2158_v0 = vmul.f32 %v2646_v31, %v2135_v3  ;;  %v2163_v23 = vrot.slane %v2157_v20, 1  ;;  %v2239_v28 = vrot.slane %v4244_v40, 5 }
 0x355   : > { %v2159_v55 = vmul.f32 %v2646_v31, %v2140_v19  ;;  %v2182_v1 = vmul.f32 %v4175_v57, %v2135_v3  ;;  %v2262_v5 = vmul.f32 %v2650_v2, %v2254_v26  ;;  %v2183_v54 = vmul.f32 %v4165_v44, %v2140_v19 }
 0x356   : > { %v2149_v29 = vmul.f32 %v2645_v48, %v2142_v41  ;;  %v2164_v37 = vrot.slane %v2158_v0, 1  ;;  %v2196_v42 = vrot.slane %v2189_v13, 2  ;;  %v2207_v38 = vmul.f32 %v2140_v19, %v4065_v50 }
 0x357   : > { %v2166_v49 = vrot.slane %v2159_v55, 1  ;;  %v2190_v14 = vmul.f32 %v2647_v52, %v2182_v1  ;;  %v2219_v25 = vrot.slane %v2213_v9, 4  ;;  %v2191_v10 = vmul.f32 %v2647_v52, %v2183_v54 }
 0x358   : > { %v2206_v24 = vmul.f32 %v2135_v3, %v4081_v7  ;;  %v2256_v47 = vmul.f32 %v2249_v32, %v2140_v19  ;;  %v2215_v51 = vmul.f32 %v2648_v4, %v2207_v38  ;;  %v2235_v35 = vmul.f32 %v2649_v18, %v2140_v19 }
 0x359   : > { %v2167_v62 = vsel %vm1871_vm9, %v2164_v37, %v2166_v49  ;;  %v2197_v27 = vrot.slane %v2190_v14, 2  ;;  %v2199_v21 = vrot.slane %v2191_v10, 2  ;;  %v2278_v63 = vmul.f32 %v2140_v19, %v4056_v22 }
 0x35a   : > { %v2171_v34 = vadd.f32 %v2167_v62, %v2149_v29  ;;  %v2264_v44 = vmul.f32 %v2650_v2, %v2256_v47  ;;  %v2294_v43 = vmul.f32 %v4214_v61, %v2140_v19  ;;  %v2309_v50 = vmul.f32 %v4175_v57, %v2140_v19 }
 0x35b   : > { %v2165_v6 = vsel %vm1871_vm9, %v2163_v23, %v2164_v37  ;;  %v2198_v7 = vsel %vm2195_vm11, %v2196_v42, %v2197_v27  ;;  %v2222_v59 = vrot.slane %v2215_v51, 4  ;;  %v2200_v8 = vsel %vm2195_vm11, %v2197_v27, %v2199_v21 }
 0x35c   : > { %v2170_v32 = vadd.f32 %v2165_v6, %v2148_v16  ;;  %v2214_v31 = vmul.f32 %v2648_v4, %v2206_v24  ;;  %v2242_v36 = vrot.slane %v2235_v35, 5  ;;  %v2204_v60 = vadd.f32 %v2200_v8, %v2171_v34  ;;  %v2654_v24 = vld [vmem:[%s4351_s3 + $0x20] ss:$0 sm:$0xff] }
 0x35d   : > { %v2234_v45 = vmul.f32 %v2649_v18, %v2135_v3  ;;  %v2255_v52 = vmul.f32 %v4170_v56, %v2135_v3  ;;  %v2271_v15 = vrot.slane %v2264_v44, 6  ;;  %v2293_v48 = vmul.f32 %v4214_v61, %v2135_v3  ;;  %v2651_v61 = vld [vmem:[%s4351_s3 + $0x18] ss:$0 sm:$0xff] }
 0x35e   : > { %v2203_v22 = vadd.f32 %v2198_v7, %v2170_v32  ;;  %v2220_v33 = vrot.slane %v2214_v31, 4  ;;  %v2277_v58 = vmul.f32 %v2135_v3, %v4054_v17  ;;  %v2300_v53 = vrot.slane %v2294_v43, 1 }
 0x35f   : > { %v2240_v57 = vrot.slane %v2234_v45, 5  ;;  %v2263_v20 = vmul.f32 %v2650_v2, %v2255_v52  ;;  %v2299_v4 = vrot.slane %v2293_v48, 1  ;;  %v2308_v19 = vmul.f32 %v4160_v46, %v2135_v3 }
 0x360   : > { %v2221_v40 = vsel %vm1903_vm7, %v2219_v25, %v2220_v33  ;;  %v2223_v26 = vsel %vm1903_vm7, %v2220_v33, %v2222_v59  ;;  %v2268_v2 = vrot.slane %v2262_v5, 6  ;;  %v2317_v46 = vmul.f32 %v4233_v30, %v2309_v50 }
 0x361   : > { %v2226_v18 = vadd.f32 %v2221_v40, %v2203_v22  ;;  %v2227_v13 = vadd.f32 %v2223_v26, %v2204_v60  ;;  %v2241_v56 = vsel %vm1944_vm8, %v2239_v28, %v2240_v57  ;;  %v2243_v16 = vsel %vm1944_vm8, %v2240_v57, %v2242_v36 }
 0x362   : > { %v2269_v17 = vrot.slane %v2263_v20, 6  ;;  %v2301_v9 = vsel %vm1871_vm9, %v2299_v4, %v2300_v53  ;;  %v2316_v41 = vmul.f32 %v4233_v30, %v2308_v19  ;;  %v2325_v3 = vrot.slane %v4253_v11, 2 }
 0x363   : > { %v2246_v0 = vadd.f32 %v2241_v56, %v2226_v18  ;;  %v2247_v23 = vadd.f32 %v2243_v16, %v2227_v13  ;;  %v2285_v1 = vmul.f32 %v2651_v61, %v2278_v63  ;;  %v2284_v5 = vmul.f32 %v2651_v61, %v2277_v58 }
 0x364   : > { %v2270_v28 = vsel %vm2174_vm12, %v2268_v2, %v2269_v17  ;;  %v2272_v55 = vsel %vm2174_vm12, %v2269_v17, %v2271_v15  ;;  %v2322_v29 = vrot.slane %v2316_v41, 2  ;;  %v2323_v42 = vrot.slane %v2317_v46, 2 }
 0x365   : > { %v2275_v37 = vadd.f32 %v2270_v28, %v2246_v0  ;;  %v2276_v54 = vadd.f32 %v2272_v55, %v2247_v23  ;;  %v2303_v30 = vsel %vm1871_vm9, %v2300_v53, %v2302_v12 }
 0x366   : > { %v2324_v38 = vsel %vm2195_vm11, %v2322_v29, %v2323_v42  ;;  %v2326_v25 = vsel %vm2195_vm11, %v2323_v42, %v2325_v3 }
 0x367   : > { %v2286_v49 = vadd.f32 %v2284_v5, %v2275_v37  ;;  %v2287_v14 = vadd.f32 %v2285_v1, %v2276_v54 }
 0x369   : > { %v2306_v11 = vadd.f32 %v2301_v9, %v2286_v49  ;;  %v2307_v10 = vadd.f32 %v2303_v30, %v2287_v14 }
 0x36b   : > { %v2329_v47 = vadd.f32 %v2324_v38, %v2306_v11  ;;  %v2330_v62 = vadd.f32 %v2326_v25, %v2307_v10 }
 0x36d   : > { %v2336_v27 = vadd.f32 %v2654_v24, %v2329_v47  ;;  %v2337_v51 = vadd.f32 %v2654_v24, %v2330_v62 }
 0x36f   : > { %v2338_v35 = vmax.f32 %v2336_v27, 0.0  ;;  %v2339_v34 = vmax.f32 %v2337_v51, 0.0 }
 0x371   : > { %v2340_v21 = vpack.c.bf16 %v2339_v34, %v2338_v35 }
 0x373   : > { %2845 = vmatmul.mubr.bf16.vlgmr.msra.gmra.mrb[32].mxu1 %v2340_v21 }
 0x446   : > { %v2444_v12 = vpop.f32.mrb[32].mxu1 }
 0x447   : > { %v2445_v44 = vadd.f32 %v2655_v39, %v2444_v12  ;;  %v2846_v63 = vpop.f32.mrb[33].mxu1 }
 0x448   : > { %v2447_v43 = vpop.f32.mrb[34].mxu1 }
 0x449   : > { %v2451_v50 = vmax.f32 %v2445_v44, 0.0  ;;  %v2448_v6 = vadd.f32 %v2655_v39, %v2447_v43  ;;  %v2847_v7 = vpop.f32.mrb[35].mxu1 }
 0x44b   : > { %2453 = vst [vmem:[%s191_s28] sm:$0xff] %v2451_v50  ;;  %v2452_v59 = vmax.f32 %v2448_v6, 0.0 }
 0x44d   : > { %2454 = vst [vmem:[%s191_s28 + $0x8] sm:$0xff] %v2452_v59 }
 0x44e   : > { %2964 = shalt.err (!%p2961_p3)
}
 0x44f   : > { %s2965_s12 = scalar_lea.hbm %s4305_s8, 256  ;;  %s2969_s20 = scalar_lea.hbm %s4352_s4, 512 }
 0x450   : > { %p2966_p4 = scmp.ne.s32.totalorder %s4305_s8, %s2965_s12  ;;  %p2970_p9 = scmp.lt.u32.totalorder %s4305_s8, %s4352_s4 }
 0x451   : > { %p2971_p10 = scmp.lt.u32.totalorder %s2969_s20, %s2965_s12  ;;  %p2973_p12 = scmp.lt.u32.totalorder %s2965_s12, %s4305_s8 }
 0x452   : > { %p2967_p7 = pnand %p2966_p4, %p3085_p5 }
 0x453   : > { %p2972_p11 = por %p2971_p10, %p2970_p9 }
 0x454   : > { %p2968_p8 = pneg %p2967_p7 }
 0x455   : > { %p2974_p13 = por %p2973_p12, %p2972_p11 }
 0x457   : > { %p2975_p0 = pnand %p2974_p13, %p2968_p8 }
 0x459   : > { %2978 = shalt.err (!%p2975_p0)
}
 0x45a   : > { %s3020_s27 = smov 128   ;;  %s3021_s28 = smov 8  }
 0x45b   : > { %2852 = dma.vmem_to_hbm [thread:$0]  (%p3085_p5), %s4300_s29, 256, %s4305_s8, %s4307_s9, %s3020_s27, %s3020_s27, %s3021_s28  }
 0x45c PF: > { %p2858_p1 = scmp.ge.s32.totalorder %s3013_s18, 2  ;;  %s2484_s5 = sand.u32 1, %s3001_s15  }
 0x45d   : > { %s2485_s6 = scalar_lea.sflag [#allocation3], %s2484_s5 }
 0x45e   : > { %p2855_p2 = pnand %p2858_p1, %p3089_p6 }
 0x460   : > { %2996 = dma.done.wait (!%p2855_p2), %s2485_s6, 256  }
 0x461   : > { %2998 = vsyncadd (!%p2855_p2), %s2485_s6, 4294967040  ;;  %p14_p3 = scmp.ge.s32.totalorder %s3072_s21, 4   ;;  %s4400_s15 = smov %s3005_s16 }
 0x462   : > { %s4401_s16 = smov %s3009_s17  ;;  %s4402_s17 = smov %s3083_s24 }
 0x463   : > { %s4403_s18 = smov %s3072_s21  ;;  %16 = sbr.rel (!%p14_p3) target bundleno = 3 (0x3), region = 71 }
 0x46a   :  { %2490 = vsyncpa [#allocation3], 1 }
 0x46b   :  { %2492 = vsyncpa [#allocation3 + $0x1], 1 }

</bundles_post_ra>
